<compile_context>
chip_gen: v7x
topology: tpu7x:2x2x1
jax: 0.10.0
libtpu: 0.0.40
codegen_flags: <defaults>
</compile_context>

<pallas_src>
import jax
import jax.numpy as jnp
from jax.experimental import pallas as pl
from jax.experimental.pallas import tpu as pltpu

EPS = 1e-5                       # torch.nn.BatchNorm1d default eps
DIM_SIZES = [64, 128, 256, 256, 128, 64]
N_INPUT = 2
N_OUTPUT = 1
PAD_C = 256                      # all hidden channel dims padded to max(dim_sizes)

_VMEM = pl.BlockSpec(memory_space=pltpu.MemorySpace.VMEM)


# ----------------------------------------------------------------------------
# Fused whole-network kernel
# ----------------------------------------------------------------------------
def _make_predictor_kernel(n_bn):
    """Kernel refs: x (B,n_in) f32, w0 (n_in,C) f32, w_slab (n_bn,C,C) bf16,
    vec (rows,C) f32 [rows 0..n_bn-1 gamma, n_bn..2n_bn-1 beta, 2n_bn b_out], o (B,1)."""

    def kernel(x_ref, w0_ref, wslab_ref, vec_ref, o_ref):
        B = x_ref.shape[0]
        inv_m = 1.0 / B
        vecs = vec_ref[...]                               # (rows, C) f32, one load

        def bn_relu(acc, i):
            # Training-mode batch stats (biased var), folded into scale/shift.
            g = vecs[i:i + 1, :]                          # (1, C)
            b = vecs[n_bn + i:n_bn + i + 1, :]            # (1, C)
            mean = jnp.sum(acc, axis=0, keepdims=True) * inv_m
            d = acc - mean
            var = jnp.sum(d * d, axis=0, keepdims=True) * inv_m
            scale = g * jax.lax.rsqrt(var + EPS)          # (1, C)  (EUP rsqrt)
            shift = b - mean * scale                      # (1, C)
            return jnp.maximum(acc * scale + shift, 0.0)  # (B, C)

        # ---- Layer 0: Linear(n_in -> C) in f32 via broadcast multiply-adds (VPU) ----
        x = x_ref[...].astype(jnp.float32)                # (B, n_in)
        w0 = w0_ref[...]                                  # (n_in, C) f32
        acc = x[:, 0:1] * w0[0:1, :]
        for k in range(1, x_ref.shape[1]):
            acc = acc + x[:, k:k + 1] * w0[k:k + 1, :]    # (B, C) f32
        h = bn_relu(acc, 0)

        # ---- Blocks 1..n_bn-1: bf16 MXU matmul, f32 accumulate, fused BN+ReLU ----
        for i in range(1, n_bn):
            w = wslab_ref[i - 1]                          # (C, C) bf16
            acc = jnp.dot(h.astype(jnp.bfloat16), w,
                          preferred_element_type=jnp.float32)
            h = bn_relu(acc, i)

        # ---- Output layer: Linear(64 -> 1) + bias (real weight lives in col 0) ----
        w_out = wslab_ref[n_bn - 1]                       # (C, C) bf16
        out = jnp.dot(h.astype(jnp.bfloat16), w_out,
                      preferred_element_type=jnp.float32)  # (B, C)
        b_out = vecs[2 * n_bn:2 * n_bn + 1, 0:1]           # (1, 1)
        o_ref[...] = (out[:, 0:1] + b_out).astype(o_ref.dtype)

    return kernel


def predictor_forward(x, w0_packed, w_slab, vec_pack):
    """Whole Predictor forward as a single fused, gridless Pallas call."""
    B = x.shape[0]
    n_bn = w_slab.shape[0]
    C = w_slab.shape[-1]
    cost = pl.CostEstimate(
        flops=2 * B * C * C * n_bn + 12 * B * C * n_bn,
        transcendentals=n_bn * C,
        bytes_accessed=(x.size + w0_packed.size + vec_pack.size + B) * 4
                       + w_slab.size * 2,
    )
    return pl.pallas_call(
        _make_predictor_kernel(n_bn),
        out_shape=jax.ShapeDtypeStruct((B, 1), jnp.float32),
        in_specs=[_VMEM, _VMEM, _VMEM, _VMEM],
        out_specs=_VMEM,
        cost_estimate=cost,
    )(x, w0_packed, w_slab, vec_pack)


# ----------------------------------------------------------------------------
# One-time parameter packing (do NOT redo per forward call)
# ----------------------------------------------------------------------------
def pack_params(params, pad_c=PAD_C):
    """Convert 'torch-layout' params into the 3 packed kernel buffers once."""
    blocks = params["blocks"]                     # [(w (in,out), gamma, beta), ...]
    n_bn = len(blocks)

    # First-layer weight: f32, zero-padded on the output/lane axis only.
    w0, _, _ = blocks[0]
    w0 = jnp.asarray(w0, jnp.float32)
    w0_packed = jnp.zeros((w0.shape[0], pad_c), jnp.float32).at[:, :w0.shape[1]].set(w0)

    # Remaining weights (blocks 1..n_bn-1 and output layer): one padded bf16 slab.
    mats = [w for (w, _, _) in blocks[1:]] + [params["w_out"]]
    slab = jnp.zeros((len(mats), pad_c, pad_c), jnp.float32)
    for i, w in enumerate(mats):
        w = jnp.asarray(w, jnp.float32)
        slab = slab.at[i, :w.shape[0], :w.shape[1]].set(w)
    w_slab = slab.astype(jnp.bfloat16)            # (n_bn, C, C)

    # Per-channel vectors: rows [gamma_0..gamma_{n-1}, beta_0..beta_{n-1}, b_out].
    n_rows = -(-(2 * n_bn + 1) // 8) * 8
    vec = jnp.zeros((n_rows, pad_c), jnp.float32)
    for i, (_, g, b) in enumerate(blocks):
        g = jnp.asarray(g, jnp.float32)
        b = jnp.asarray(b, jnp.float32)
        vec = vec.at[i, :g.shape[0]].set(g)       # padded gammas stay 0 => pad lanes
        vec = vec.at[n_bn + i, :b.shape[0]].set(b)  # remain exactly 0 through BN/ReLU
    b_out = jnp.asarray(params["b_out"], jnp.float32)
    vec = vec.at[2 * n_bn, :b_out.shape[0]].set(b_out)

    return w0_packed, w_slab, vec


# ----------------------------------------------------------------------------
# Parameters (deterministic; mirror torch default init scales).
# Weights stored as (in, out) — transpose torch's (out, in) when loading a checkpoint.
# ----------------------------------------------------------------------------
def init_params(key, dim_sizes=DIM_SIZES, n_input=N_INPUT, n_output=N_OUTPUT):
    dims = [n_input] + list(dim_sizes)
    keys = iter(jax.random.split(key, 2 * len(dims) + 4))

    def linear_w(fan_in, fan_out):
        bound = 1.0 / jnp.sqrt(float(fan_in))
        return jax.random.uniform(next(keys), (fan_in, fan_out), jnp.float32,
                                  -bound, bound)

    blocks = []
    for i in range(len(dim_sizes)):
        cin, cout = dims[i], dims[i + 1]
        blocks.append((linear_w(cin, cout),
                       jnp.ones((cout,), jnp.float32),     # BN gamma default
                       jnp.zeros((cout,), jnp.float32)))   # BN beta default

    fan_in = dim_sizes[-1]
    bound = 1.0 / jnp.sqrt(float(fan_in))
    w_out = linear_w(fan_in, n_output)
    b_out = jax.random.uniform(next(keys), (n_output,), jnp.float32, -bound, bound)
    return {"blocks": blocks, "w_out": w_out, "b_out": b_out}


# ----------------------------------------------------------------------------
if __name__ == "__main__":
    key = jax.random.PRNGKey(0)
    pkey, xkey = jax.random.split(key)
    params = init_params(pkey)
    w0_packed, w_slab, vec_pack = pack_params(params)   # packed ONCE

    B = 8  # BatchNorm training stats need B > 1; one sublane group
    x = jax.random.normal(xkey, (B, N_INPUT), jnp.float32)

    fwd = jax.jit(predictor_forward)
    y = fwd(x, w0_packed, w_slab, vec_pack)
    jax.block_until_ready(y)
    assert y.shape == (B, N_OUTPUT) and bool(jnp.all(jnp.isfinite(y)))
    print("KERNEL_OK")
</pallas_src>

<mosaic_0001>
module attributes {stable_mosaic.version = 11 : i64} {
  func.func @kernel(%arg0: memref<8x2xf32, #tpu.memory_space<vmem>>, %arg1: memref<2x256xf32, #tpu.memory_space<vmem>>, %arg2: memref<6x256x256xbf16, #tpu.memory_space<vmem>>, %arg3: memref<16x256xf32, #tpu.memory_space<vmem>>, %arg4: memref<8x1xf32, #tpu.memory_space<vmem>>) attributes {dimension_semantics = [], scalar_prefetch = 0 : i64, scratch_operands = 0 : i64, tpu.core_type = #tpu.core_type<tc>} {
    %c0 = arith.constant 0 : index
    %c0_0 = arith.constant 0 : index
    %0 = vector.load %arg3[%c0, %c0_0] : memref<16x256xf32, #tpu.memory_space<vmem>>, vector<16x256xf32>
    %c0_1 = arith.constant 0 : index
    %c0_2 = arith.constant 0 : index
    %1 = vector.load %arg0[%c0_1, %c0_2] : memref<8x2xf32, #tpu.memory_space<vmem>>, vector<8x2xf32>
    %c0_3 = arith.constant 0 : index
    %c0_4 = arith.constant 0 : index
    %2 = vector.load %arg1[%c0_3, %c0_4] : memref<2x256xf32, #tpu.memory_space<vmem>>, vector<2x256xf32>
    %3 = vector.extract_strided_slice %1 {offsets = [0, 0], sizes = [8, 1], strides = [1, 1]} : vector<8x2xf32> to vector<8x1xf32>
    %4 = vector.extract_strided_slice %2 {offsets = [0, 0], sizes = [1, 256], strides = [1, 1]} : vector<2x256xf32> to vector<1x256xf32>
    %5 = vector.broadcast %3 : vector<8x1xf32> to vector<8x256xf32>
    %6 = vector.broadcast %4 : vector<1x256xf32> to vector<8x256xf32>
    %7 = arith.mulf %5, %6 : vector<8x256xf32>
    %8 = vector.extract_strided_slice %1 {offsets = [0, 1], sizes = [8, 1], strides = [1, 1]} : vector<8x2xf32> to vector<8x1xf32>
    %9 = vector.extract_strided_slice %2 {offsets = [1, 0], sizes = [1, 256], strides = [1, 1]} : vector<2x256xf32> to vector<1x256xf32>
    %10 = vector.broadcast %8 : vector<8x1xf32> to vector<8x256xf32>
    %11 = vector.broadcast %9 : vector<1x256xf32> to vector<8x256xf32>
    %12 = arith.mulf %10, %11 : vector<8x256xf32>
    %13 = arith.addf %7, %12 : vector<8x256xf32>
    %14 = vector.extract_strided_slice %0 {offsets = [0, 0], sizes = [1, 256], strides = [1, 1]} : vector<16x256xf32> to vector<1x256xf32>
    %15 = vector.extract_strided_slice %0 {offsets = [6, 0], sizes = [1, 256], strides = [1, 1]} : vector<16x256xf32> to vector<1x256xf32>
    %cst = arith.constant dense<0.000000e+00> : vector<256xf32>
    %16 = vector.multi_reduction <add>, %13, %cst [0] : vector<8x256xf32> to vector<256xf32>
    %17 = vector.shape_cast %16 : vector<256xf32> to vector<1x256xf32>
    %cst_5 = arith.constant 1.250000e-01 : f32
    %18 = vector.broadcast %cst_5 : f32 to vector<1x256xf32>
    %19 = arith.mulf %17, %18 : vector<1x256xf32>
    %20 = vector.broadcast %19 : vector<1x256xf32> to vector<8x256xf32>
    %21 = arith.subf %13, %20 : vector<8x256xf32>
    %22 = arith.mulf %21, %21 : vector<8x256xf32>
    %cst_6 = arith.constant dense<0.000000e+00> : vector<256xf32>
    %23 = vector.multi_reduction <add>, %22, %cst_6 [0] : vector<8x256xf32> to vector<256xf32>
    %24 = vector.shape_cast %23 : vector<256xf32> to vector<1x256xf32>
    %cst_7 = arith.constant 1.250000e-01 : f32
    %25 = vector.broadcast %cst_7 : f32 to vector<1x256xf32>
    %26 = arith.mulf %24, %25 : vector<1x256xf32>
    %cst_8 = arith.constant 9.99999974E-6 : f32
    %27 = vector.broadcast %cst_8 : f32 to vector<1x256xf32>
    %28 = arith.addf %26, %27 : vector<1x256xf32>
    %29 = math.rsqrt %28 : vector<1x256xf32>
    %30 = arith.mulf %14, %29 : vector<1x256xf32>
    %31 = arith.mulf %19, %30 : vector<1x256xf32>
    %32 = arith.subf %15, %31 : vector<1x256xf32>
    %33 = vector.broadcast %30 : vector<1x256xf32> to vector<8x256xf32>
    %34 = arith.mulf %13, %33 : vector<8x256xf32>
    %35 = vector.broadcast %32 : vector<1x256xf32> to vector<8x256xf32>
    %36 = arith.addf %34, %35 : vector<8x256xf32>
    %cst_9 = arith.constant 0.000000e+00 : f32
    %37 = vector.broadcast %cst_9 : f32 to vector<8x256xf32>
    %38 = arith.maximumf %36, %37 : vector<8x256xf32>
    %c0_10 = arith.constant 0 : index
    %c0_11 = arith.constant 0 : index
    %c0_12 = arith.constant 0 : index
    %39 = vector.load %arg2[%c0_10, %c0_11, %c0_12] : memref<6x256x256xbf16, #tpu.memory_space<vmem>>, vector<1x256x256xbf16>
    %40 = vector.shape_cast %39 : vector<1x256x256xbf16> to vector<256x256xbf16>
    %41 = arith.truncf %38 : vector<8x256xf32> to vector<8x256xbf16>
    %cst_13 = arith.constant dense<0.000000e+00> : vector<8x256xf32>
    %42 = tpu.matmul %41, %40, %cst_13 {dimension_numbers = #tpu.dot_dimension_numbers<[1], [0], [0], [1], [0, 0, 1, 1], [], []>} : vector<8x256xbf16>, vector<256x256xbf16>, vector<8x256xf32> -> vector<8x256xf32>
    %43 = vector.extract_strided_slice %0 {offsets = [1, 0], sizes = [1, 256], strides = [1, 1]} : vector<16x256xf32> to vector<1x256xf32>
    %44 = vector.extract_strided_slice %0 {offsets = [7, 0], sizes = [1, 256], strides = [1, 1]} : vector<16x256xf32> to vector<1x256xf32>
    %cst_14 = arith.constant dense<0.000000e+00> : vector<256xf32>
    %45 = vector.multi_reduction <add>, %42, %cst_14 [0] : vector<8x256xf32> to vector<256xf32>
    %46 = vector.shape_cast %45 : vector<256xf32> to vector<1x256xf32>
    %cst_15 = arith.constant 1.250000e-01 : f32
    %47 = vector.broadcast %cst_15 : f32 to vector<1x256xf32>
    %48 = arith.mulf %46, %47 : vector<1x256xf32>
    %49 = vector.broadcast %48 : vector<1x256xf32> to vector<8x256xf32>
    %50 = arith.subf %42, %49 : vector<8x256xf32>
    %51 = arith.mulf %50, %50 : vector<8x256xf32>
    %cst_16 = arith.constant dense<0.000000e+00> : vector<256xf32>
    %52 = vector.multi_reduction <add>, %51, %cst_16 [0] : vector<8x256xf32> to vector<256xf32>
    %53 = vector.shape_cast %52 : vector<256xf32> to vector<1x256xf32>
    %cst_17 = arith.constant 1.250000e-01 : f32
    %54 = vector.broadcast %cst_17 : f32 to vector<1x256xf32>
    %55 = arith.mulf %53, %54 : vector<1x256xf32>
    %cst_18 = arith.constant 9.99999974E-6 : f32
    %56 = vector.broadcast %cst_18 : f32 to vector<1x256xf32>
    %57 = arith.addf %55, %56 : vector<1x256xf32>
    %58 = math.rsqrt %57 : vector<1x256xf32>
    %59 = arith.mulf %43, %58 : vector<1x256xf32>
    %60 = arith.mulf %48, %59 : vector<1x256xf32>
    %61 = arith.subf %44, %60 : vector<1x256xf32>
    %62 = vector.broadcast %59 : vector<1x256xf32> to vector<8x256xf32>
    %63 = arith.mulf %42, %62 : vector<8x256xf32>
    %64 = vector.broadcast %61 : vector<1x256xf32> to vector<8x256xf32>
    %65 = arith.addf %63, %64 : vector<8x256xf32>
    %cst_19 = arith.constant 0.000000e+00 : f32
    %66 = vector.broadcast %cst_19 : f32 to vector<8x256xf32>
    %67 = arith.maximumf %65, %66 : vector<8x256xf32>
    %c1 = arith.constant 1 : index
    %c0_20 = arith.constant 0 : index
    %c0_21 = arith.constant 0 : index
    %68 = vector.load %arg2[%c1, %c0_20, %c0_21] : memref<6x256x256xbf16, #tpu.memory_space<vmem>>, vector<1x256x256xbf16>
    %69 = vector.shape_cast %68 : vector<1x256x256xbf16> to vector<256x256xbf16>
    %70 = arith.truncf %67 : vector<8x256xf32> to vector<8x256xbf16>
    %cst_22 = arith.constant dense<0.000000e+00> : vector<8x256xf32>
    %71 = tpu.matmul %70, %69, %cst_22 {dimension_numbers = #tpu.dot_dimension_numbers<[1], [0], [0], [1], [0, 0, 1, 1], [], []>} : vector<8x256xbf16>, vector<256x256xbf16>, vector<8x256xf32> -> vector<8x256xf32>
    %72 = vector.extract_strided_slice %0 {offsets = [2, 0], sizes = [1, 256], strides = [1, 1]} : vector<16x256xf32> to vector<1x256xf32>
    %73 = vector.extract_strided_slice %0 {offsets = [8, 0], sizes = [1, 256], strides = [1, 1]} : vector<16x256xf32> to vector<1x256xf32>
    %cst_23 = arith.constant dense<0.000000e+00> : vector<256xf32>
    %74 = vector.multi_reduction <add>, %71, %cst_23 [0] : vector<8x256xf32> to vector<256xf32>
    %75 = vector.shape_cast %74 : vector<256xf32> to vector<1x256xf32>
    %cst_24 = arith.constant 1.250000e-01 : f32
    %76 = vector.broadcast %cst_24 : f32 to vector<1x256xf32>
    %77 = arith.mulf %75, %76 : vector<1x256xf32>
    %78 = vector.broadcast %77 : vector<1x256xf32> to vector<8x256xf32>
    %79 = arith.subf %71, %78 : vector<8x256xf32>
    %80 = arith.mulf %79, %79 : vector<8x256xf32>
    %cst_25 = arith.constant dense<0.000000e+00> : vector<256xf32>
    %81 = vector.multi_reduction <add>, %80, %cst_25 [0] : vector<8x256xf32> to vector<256xf32>
    %82 = vector.shape_cast %81 : vector<256xf32> to vector<1x256xf32>
    %cst_26 = arith.constant 1.250000e-01 : f32
    %83 = vector.broadcast %cst_26 : f32 to vector<1x256xf32>
    %84 = arith.mulf %82, %83 : vector<1x256xf32>
    %cst_27 = arith.constant 9.99999974E-6 : f32
    %85 = vector.broadcast %cst_27 : f32 to vector<1x256xf32>
    %86 = arith.addf %84, %85 : vector<1x256xf32>
    %87 = math.rsqrt %86 : vector<1x256xf32>
    %88 = arith.mulf %72, %87 : vector<1x256xf32>
    %89 = arith.mulf %77, %88 : vector<1x256xf32>
    %90 = arith.subf %73, %89 : vector<1x256xf32>
    %91 = vector.broadcast %88 : vector<1x256xf32> to vector<8x256xf32>
    %92 = arith.mulf %71, %91 : vector<8x256xf32>
    %93 = vector.broadcast %90 : vector<1x256xf32> to vector<8x256xf32>
    %94 = arith.addf %92, %93 : vector<8x256xf32>
    %cst_28 = arith.constant 0.000000e+00 : f32
    %95 = vector.broadcast %cst_28 : f32 to vector<8x256xf32>
    %96 = arith.maximumf %94, %95 : vector<8x256xf32>
    %c2 = arith.constant 2 : index
    %c0_29 = arith.constant 0 : index
    %c0_30 = arith.constant 0 : index
    %97 = vector.load %arg2[%c2, %c0_29, %c0_30] : memref<6x256x256xbf16, #tpu.memory_space<vmem>>, vector<1x256x256xbf16>
    %98 = vector.shape_cast %97 : vector<1x256x256xbf16> to vector<256x256xbf16>
    %99 = arith.truncf %96 : vector<8x256xf32> to vector<8x256xbf16>
    %cst_31 = arith.constant dense<0.000000e+00> : vector<8x256xf32>
    %100 = tpu.matmul %99, %98, %cst_31 {dimension_numbers = #tpu.dot_dimension_numbers<[1], [0], [0], [1], [0, 0, 1, 1], [], []>} : vector<8x256xbf16>, vector<256x256xbf16>, vector<8x256xf32> -> vector<8x256xf32>
    %101 = vector.extract_strided_slice %0 {offsets = [3, 0], sizes = [1, 256], strides = [1, 1]} : vector<16x256xf32> to vector<1x256xf32>
    %102 = vector.extract_strided_slice %0 {offsets = [9, 0], sizes = [1, 256], strides = [1, 1]} : vector<16x256xf32> to vector<1x256xf32>
    %cst_32 = arith.constant dense<0.000000e+00> : vector<256xf32>
    %103 = vector.multi_reduction <add>, %100, %cst_32 [0] : vector<8x256xf32> to vector<256xf32>
    %104 = vector.shape_cast %103 : vector<256xf32> to vector<1x256xf32>
    %cst_33 = arith.constant 1.250000e-01 : f32
    %105 = vector.broadcast %cst_33 : f32 to vector<1x256xf32>
    %106 = arith.mulf %104, %105 : vector<1x256xf32>
    %107 = vector.broadcast %106 : vector<1x256xf32> to vector<8x256xf32>
    %108 = arith.subf %100, %107 : vector<8x256xf32>
    %109 = arith.mulf %108, %108 : vector<8x256xf32>
    %cst_34 = arith.constant dense<0.000000e+00> : vector<256xf32>
    %110 = vector.multi_reduction <add>, %109, %cst_34 [0] : vector<8x256xf32> to vector<256xf32>
    %111 = vector.shape_cast %110 : vector<256xf32> to vector<1x256xf32>
    %cst_35 = arith.constant 1.250000e-01 : f32
    %112 = vector.broadcast %cst_35 : f32 to vector<1x256xf32>
    %113 = arith.mulf %111, %112 : vector<1x256xf32>
    %cst_36 = arith.constant 9.99999974E-6 : f32
    %114 = vector.broadcast %cst_36 : f32 to vector<1x256xf32>
    %115 = arith.addf %113, %114 : vector<1x256xf32>
    %116 = math.rsqrt %115 : vector<1x256xf32>
    %117 = arith.mulf %101, %116 : vector<1x256xf32>
    %118 = arith.mulf %106, %117 : vector<1x256xf32>
    %119 = arith.subf %102, %118 : vector<1x256xf32>
    %120 = vector.broadcast %117 : vector<1x256xf32> to vector<8x256xf32>
    %121 = arith.mulf %100, %120 : vector<8x256xf32>
    %122 = vector.broadcast %119 : vector<1x256xf32> to vector<8x256xf32>
    %123 = arith.addf %121, %122 : vector<8x256xf32>
    %cst_37 = arith.constant 0.000000e+00 : f32
    %124 = vector.broadcast %cst_37 : f32 to vector<8x256xf32>
    %125 = arith.maximumf %123, %124 : vector<8x256xf32>
    %c3 = arith.constant 3 : index
    %c0_38 = arith.constant 0 : index
    %c0_39 = arith.constant 0 : index
    %126 = vector.load %arg2[%c3, %c0_38, %c0_39] : memref<6x256x256xbf16, #tpu.memory_space<vmem>>, vector<1x256x256xbf16>
    %127 = vector.shape_cast %126 : vector<1x256x256xbf16> to vector<256x256xbf16>
    %128 = arith.truncf %125 : vector<8x256xf32> to vector<8x256xbf16>
    %cst_40 = arith.constant dense<0.000000e+00> : vector<8x256xf32>
    %129 = tpu.matmul %128, %127, %cst_40 {dimension_numbers = #tpu.dot_dimension_numbers<[1], [0], [0], [1], [0, 0, 1, 1], [], []>} : vector<8x256xbf16>, vector<256x256xbf16>, vector<8x256xf32> -> vector<8x256xf32>
    %130 = vector.extract_strided_slice %0 {offsets = [4, 0], sizes = [1, 256], strides = [1, 1]} : vector<16x256xf32> to vector<1x256xf32>
    %131 = vector.extract_strided_slice %0 {offsets = [10, 0], sizes = [1, 256], strides = [1, 1]} : vector<16x256xf32> to vector<1x256xf32>
    %cst_41 = arith.constant dense<0.000000e+00> : vector<256xf32>
    %132 = vector.multi_reduction <add>, %129, %cst_41 [0] : vector<8x256xf32> to vector<256xf32>
    %133 = vector.shape_cast %132 : vector<256xf32> to vector<1x256xf32>
    %cst_42 = arith.constant 1.250000e-01 : f32
    %134 = vector.broadcast %cst_42 : f32 to vector<1x256xf32>
    %135 = arith.mulf %133, %134 : vector<1x256xf32>
    %136 = vector.broadcast %135 : vector<1x256xf32> to vector<8x256xf32>
    %137 = arith.subf %129, %136 : vector<8x256xf32>
    %138 = arith.mulf %137, %137 : vector<8x256xf32>
    %cst_43 = arith.constant dense<0.000000e+00> : vector<256xf32>
    %139 = vector.multi_reduction <add>, %138, %cst_43 [0] : vector<8x256xf32> to vector<256xf32>
    %140 = vector.shape_cast %139 : vector<256xf32> to vector<1x256xf32>
    %cst_44 = arith.constant 1.250000e-01 : f32
    %141 = vector.broadcast %cst_44 : f32 to vector<1x256xf32>
    %142 = arith.mulf %140, %141 : vector<1x256xf32>
    %cst_45 = arith.constant 9.99999974E-6 : f32
    %143 = vector.broadcast %cst_45 : f32 to vector<1x256xf32>
    %144 = arith.addf %142, %143 : vector<1x256xf32>
    %145 = math.rsqrt %144 : vector<1x256xf32>
    %146 = arith.mulf %130, %145 : vector<1x256xf32>
    %147 = arith.mulf %135, %146 : vector<1x256xf32>
    %148 = arith.subf %131, %147 : vector<1x256xf32>
    %149 = vector.broadcast %146 : vector<1x256xf32> to vector<8x256xf32>
    %150 = arith.mulf %129, %149 : vector<8x256xf32>
    %151 = vector.broadcast %148 : vector<1x256xf32> to vector<8x256xf32>
    %152 = arith.addf %150, %151 : vector<8x256xf32>
    %cst_46 = arith.constant 0.000000e+00 : f32
    %153 = vector.broadcast %cst_46 : f32 to vector<8x256xf32>
    %154 = arith.maximumf %152, %153 : vector<8x256xf32>
    %c4 = arith.constant 4 : index
    %c0_47 = arith.constant 0 : index
    %c0_48 = arith.constant 0 : index
    %155 = vector.load %arg2[%c4, %c0_47, %c0_48] : memref<6x256x256xbf16, #tpu.memory_space<vmem>>, vector<1x256x256xbf16>
    %156 = vector.shape_cast %155 : vector<1x256x256xbf16> to vector<256x256xbf16>
    %157 = arith.truncf %154 : vector<8x256xf32> to vector<8x256xbf16>
    %cst_49 = arith.constant dense<0.000000e+00> : vector<8x256xf32>
    %158 = tpu.matmul %157, %156, %cst_49 {dimension_numbers = #tpu.dot_dimension_numbers<[1], [0], [0], [1], [0, 0, 1, 1], [], []>} : vector<8x256xbf16>, vector<256x256xbf16>, vector<8x256xf32> -> vector<8x256xf32>
    %159 = vector.extract_strided_slice %0 {offsets = [5, 0], sizes = [1, 256], strides = [1, 1]} : vector<16x256xf32> to vector<1x256xf32>
    %160 = vector.extract_strided_slice %0 {offsets = [11, 0], sizes = [1, 256], strides = [1, 1]} : vector<16x256xf32> to vector<1x256xf32>
    %cst_50 = arith.constant dense<0.000000e+00> : vector<256xf32>
    %161 = vector.multi_reduction <add>, %158, %cst_50 [0] : vector<8x256xf32> to vector<256xf32>
    %162 = vector.shape_cast %161 : vector<256xf32> to vector<1x256xf32>
    %cst_51 = arith.constant 1.250000e-01 : f32
    %163 = vector.broadcast %cst_51 : f32 to vector<1x256xf32>
    %164 = arith.mulf %162, %163 : vector<1x256xf32>
    %165 = vector.broadcast %164 : vector<1x256xf32> to vector<8x256xf32>
    %166 = arith.subf %158, %165 : vector<8x256xf32>
    %167 = arith.mulf %166, %166 : vector<8x256xf32>
    %cst_52 = arith.constant dense<0.000000e+00> : vector<256xf32>
    %168 = vector.multi_reduction <add>, %167, %cst_52 [0] : vector<8x256xf32> to vector<256xf32>
    %169 = vector.shape_cast %168 : vector<256xf32> to vector<1x256xf32>
    %cst_53 = arith.constant 1.250000e-01 : f32
    %170 = vector.broadcast %cst_53 : f32 to vector<1x256xf32>
    %171 = arith.mulf %169, %170 : vector<1x256xf32>
    %cst_54 = arith.constant 9.99999974E-6 : f32
    %172 = vector.broadcast %cst_54 : f32 to vector<1x256xf32>
    %173 = arith.addf %171, %172 : vector<1x256xf32>
    %174 = math.rsqrt %173 : vector<1x256xf32>
    %175 = arith.mulf %159, %174 : vector<1x256xf32>
    %176 = arith.mulf %164, %175 : vector<1x256xf32>
    %177 = arith.subf %160, %176 : vector<1x256xf32>
    %178 = vector.broadcast %175 : vector<1x256xf32> to vector<8x256xf32>
    %179 = arith.mulf %158, %178 : vector<8x256xf32>
    %180 = vector.broadcast %177 : vector<1x256xf32> to vector<8x256xf32>
    %181 = arith.addf %179, %180 : vector<8x256xf32>
    %cst_55 = arith.constant 0.000000e+00 : f32
    %182 = vector.broadcast %cst_55 : f32 to vector<8x256xf32>
    %183 = arith.maximumf %181, %182 : vector<8x256xf32>
    %c5 = arith.constant 5 : index
    %c0_56 = arith.constant 0 : index
    %c0_57 = arith.constant 0 : index
    %184 = vector.load %arg2[%c5, %c0_56, %c0_57] : memref<6x256x256xbf16, #tpu.memory_space<vmem>>, vector<1x256x256xbf16>
    %185 = vector.shape_cast %184 : vector<1x256x256xbf16> to vector<256x256xbf16>
    %186 = arith.truncf %183 : vector<8x256xf32> to vector<8x256xbf16>
    %cst_58 = arith.constant dense<0.000000e+00> : vector<8x256xf32>
    %187 = tpu.matmul %186, %185, %cst_58 {dimension_numbers = #tpu.dot_dimension_numbers<[1], [0], [0], [1], [0, 0, 1, 1], [], []>} : vector<8x256xbf16>, vector<256x256xbf16>, vector<8x256xf32> -> vector<8x256xf32>
    %188 = vector.extract_strided_slice %0 {offsets = [12, 0], sizes = [1, 1], strides = [1, 1]} : vector<16x256xf32> to vector<1x1xf32>
    %189 = vector.extract_strided_slice %187 {offsets = [0, 0], sizes = [8, 1], strides = [1, 1]} : vector<8x256xf32> to vector<8x1xf32>
    %190 = vector.broadcast %188 : vector<1x1xf32> to vector<8x1xf32>
    %191 = arith.addf %189, %190 : vector<8x1xf32>
    %c0_59 = arith.constant 0 : index
    %c0_60 = arith.constant 0 : index
    %192 = vector.load %arg4[%c0_59, %c0_60] : memref<8x1xf32, #tpu.memory_space<vmem>>, vector<8x1xf32>
    tpu.vector_store %arg4[%c0_59, %c0_60], %191 {strides = array<i32>} : memref<8x1xf32, #tpu.memory_space<vmem>>, vector<8x1xf32>,
    return
  }
}

</mosaic_0001>

<bundles_post_ra>
// kernel: predictor_forward.1
= control target key start
LH: loop header
LB: loop body
LE: loop exit
PB: predicated region body
PF: predicated region fallthrough
CT: control target
= control target key end

     0   :  { %9 = vsyncpa [#allocation3], 0  ;;  %s2664_s0 = inlined_call_operand.vmem [shape: f32[8,2], index: 0, kind: input, shape index: {}]   ;;  %s2665_s1 = inlined_call_operand.vmem [shape: f32[2,256], index: 1, kind: input, shape index: {}]   ;;  %s2666_s2 = inlined_call_operand.hbm [shape: bf16[6,256,256], index: 2, kind: input, shape index: {}]   ;;  %s2667_s3 = inlined_call_operand.hbm [shape: f32[16,256], index: 3, kind: input, shape index: {}]   ;;  %s2668_s4 = inlined_call_operand.vmem [shape: f32[8,1], index: 4, kind: output, shape index: {}]  }
   0x1   :  { %10 = vsyncpa [#allocation5], 0  ;;  %s2514_s15 = smov [#allocation2]   ;;  %s2466_s19 = scalar_lea.hbm %s2666_s2, 24576 }
   0x2   :  { %s20_s16 = sshll.u32 %s2514_s15, 4  ;;  %p2467_p0 = scmp.ne.s32.totalorder %s2666_s2, %s2466_s19  ;;  %s21_s16 = int_to_ptr.vmem [resolvable:$true] %s20_s16 }
   0x3   :  { %p2470_p1 = scmp.lt.u32.totalorder %s2466_s19, %s2666_s2 }
   0x5   :  { %p2472_p2 = pnand %p2470_p1, %p2467_p0 }
   0x7   :  { %2475 = shalt.err (!%p2472_p2)
}
   0x8   :  { %s2476_s24 = scalar_lea.vmem %s21_s16, 24576  ;;  %p2481_p4 = scmp.lt.s32.totalorder %s21_s16, %s21_s16 }
   0x9   :  { %p2477_p3 = scmp.ne.s32.totalorder %s21_s16, %s2476_s24  ;;  %p2482_p5 = scmp.lt.s32.totalorder %s2476_s24, %s2476_s24 }
   0xb   :  { %p2483_p6 = por %p2482_p5, %p2481_p4 }
   0xd   :  { %p2484_p7 = pnand %p2483_p6, %p2477_p3 }
   0xf   :  { %2487 = shalt.err (!%p2484_p7)
}
  0x10   :  { %s2515_s25 = smov 128   ;;  %s2516_s26 = smov 8  }
  0x11   :  { %26 = dma.hbm_to_vmem [thread:$0]  %s2666_s2, 24576, %s21_s16, [#allocation3], %s2515_s25, %s2515_s25, %s2516_s26  }
  0x12   :  { %s2517_s29 = smov [#allocation4]   ;;  %s2488_s7 = scalar_lea.hbm %s2667_s3, 512 }
  0x13   :  { %s32_s30 = sshll.u32 %s2517_s29, 4  ;;  %p2489_p8 = scmp.ne.s32.totalorder %s2667_s3, %s2488_s7  ;;  %s33_s30 = int_to_ptr.vmem [resolvable:$true] %s32_s30 }
  0x14   :  { %p2492_p9 = scmp.lt.u32.totalorder %s2488_s7, %s2667_s3 }
  0x16   :  { %p2494_p10 = pnand %p2492_p9, %p2489_p8 }
  0x18   :  { %2497 = shalt.err (!%p2494_p10)
}
  0x19   :  { %s2498_s12 = scalar_lea.vmem %s33_s30, 512  ;;  %p2503_p12 = scmp.lt.s32.totalorder %s33_s30, %s33_s30 }
  0x1a   :  { %p2499_p11 = scmp.ne.s32.totalorder %s33_s30, %s2498_s12  ;;  %p2504_p13 = scmp.lt.s32.totalorder %s2498_s12, %s2498_s12 }
  0x1c   :  { %p2505_p0 = por %p2504_p13, %p2503_p12 }
  0x1e   :  { %p2506_p1 = pnand %p2505_p0, %p2499_p11 }
  0x20   :  { %2509 = shalt.err (!%p2506_p1)
}
  0x21   :  { %s2518_s2 = smov 256   ;;  %s2519_s13 = smov 16  }
  0x22   :  { %38 = dma.hbm_to_vmem [thread:$0]  %s2667_s3, 512, %s33_s30, [#allocation5], %s2518_s2, %s2518_s2, %s2519_s13  }
  0x23   :  { %2510 = dma.done.wait [#allocation3], 24576  }
  0x24   :  { %2511 = vsyncadd [#allocation3], 4294942720 }
  0x25   :  { %2512 = dma.done.wait [#allocation5], 512  }
  0x26   :  { %2513 = vsyncadd [#allocation5], 4294966784  ;;  %v2520_v0 = vmov 0   ;;  %v49_v1 = vld [vmem:[%s2664_s0] sm:$0xff]  ;;  %v2521_v2 = vmov 1   ;;  %v57_v35 = vlaneseq  ;;  %vm1942_vm0 = vcmask 7168  }
  0x27   :  { %2150 = vset.pattern.permute.xlu0 %v2520_v0  ;;  %v2152_v3 = vld [vmem:[#allocation2 + $0x4] ss:$8 sps:$4 sm:$0xff]   ;;  %v2154_v4 = vld [vmem:[#allocation2] ss:$8 sps:$4 sm:$0xff]   ;;  %v2155_v5 = vld [vmem:[#allocation2 + $0x14] ss:$8 sps:$4 sm:$0xff]  }
  0x28   :  { %53 = vperm.xlu0 %2150, %v49_v1   ;;  %367 = vmatprep.subr.bf16.mxu0 %v2152_v3  ;;  %v2157_v6 = vld [vmem:[#allocation2 + $0x10] ss:$8 sps:$4 sm:$0xff]   ;;  %v2158_v7 = vld [vmem:[#allocation2 + $0x24] ss:$8 sps:$4 sm:$0xff]   ;;  %v2160_v8 = vld [vmem:[#allocation2 + $0x20] ss:$8 sps:$4 sm:$0xff]  }
  0x29   :  { %368 = vmatpush1.bf16.msra.mxu0 %v2154_v4  ;;  %v2161_v9 = vld [vmem:[#allocation2 + $0x34] ss:$8 sps:$4 sm:$0xff]   ;;  %v2163_v10 = vld [vmem:[#allocation2 + $0x30] ss:$8 sps:$4 sm:$0xff]   ;;  %v2164_v11 = vld [vmem:[#allocation2 + $0x44] ss:$8 sps:$4 sm:$0xff]  }
  0x2a   :  { %369 = vmatprep.subr.bf16.mxu0 %v2155_v5  ;;  %v2166_v12 = vld [vmem:[#allocation2 + $0x40] ss:$8 sps:$4 sm:$0xff]   ;;  %v2167_v13 = vld [vmem:[#allocation2 + $0x54] ss:$8 sps:$4 sm:$0xff]   ;;  %v2169_v14 = vld [vmem:[#allocation2 + $0x50] ss:$8 sps:$4 sm:$0xff]  }
  0x2b   :  { %v2170_v15 = vld [vmem:[#allocation2 + $0x64] ss:$8 sps:$4 sm:$0xff]   ;;  %v2172_v16 = vld [vmem:[#allocation2 + $0x60] ss:$8 sps:$4 sm:$0xff]   ;;  %v2173_v17 = vld [vmem:[#allocation2 + $0x74] ss:$8 sps:$4 sm:$0xff]  }
  0x2c   :  { %2151 = vset.pattern.permute.xlu0 %v2521_v2  ;;  %v2175_v18 = vld [vmem:[#allocation2 + $0x70] ss:$8 sps:$4 sm:$0xff]   ;;  %v2176_v19 = vld [vmem:[#allocation2 + $0x84] ss:$8 sps:$4 sm:$0xff]   ;;  %v2178_v20 = vld [vmem:[#allocation2 + $0x80] ss:$8 sps:$4 sm:$0xff]  }
  0x2d   :  { %78 = vperm.xlu0 %2151, %v49_v1   ;;  %370 = vmatpush1.bf16.msra.mxu0 %v2157_v6  ;;  %v2179_v21 = vld [vmem:[#allocation2 + $0x94] ss:$8 sps:$4 sm:$0xff]   ;;  %v2181_v22 = vld [vmem:[#allocation2 + $0x90] ss:$8 sps:$4 sm:$0xff]   ;;  %v2182_v23 = vld [vmem:[#allocation2 + $0xa4] ss:$8 sps:$4 sm:$0xff]  }
  0x2e   :  { %371 = vmatprep.subr.bf16.mxu0 %v2158_v7  ;;  %v2184_v24 = vld [vmem:[#allocation2 + $0xa0] ss:$8 sps:$4 sm:$0xff]   ;;  %v2185_v25 = vld [vmem:[#allocation2 + $0xb4] ss:$8 sps:$4 sm:$0xff]   ;;  %v2187_v26 = vld [vmem:[#allocation2 + $0xb0] ss:$8 sps:$4 sm:$0xff]  }
  0x2f   :  { %v2188_v27 = vld [vmem:[#allocation2 + $0xc4] ss:$8 sps:$4 sm:$0xff]   ;;  %v2190_v28 = vld [vmem:[#allocation2 + $0xc0] ss:$8 sps:$4 sm:$0xff]   ;;  %v2191_v29 = vld [vmem:[#allocation2 + $0xd4] ss:$8 sps:$4 sm:$0xff]  }
  0x30   :  { %v2193_v30 = vld [vmem:[#allocation2 + $0xd0] ss:$8 sps:$4 sm:$0xff]   ;;  %v2194_v31 = vld [vmem:[#allocation2 + $0xe4] ss:$8 sps:$4 sm:$0xff]   ;;  %v2196_v32 = vld [vmem:[#allocation2 + $0xe0] ss:$8 sps:$4 sm:$0xff]  }
  0x31   :  { %372 = vmatpush1.bf16.msra.mxu0 %v2160_v8  ;;  %v2197_v33 = vld [vmem:[#allocation2 + $0xf4] ss:$8 sps:$4 sm:$0xff]   ;;  %v2199_v34 = vld [vmem:[#allocation2 + $0xf0] ss:$8 sps:$4 sm:$0xff]   ;;  %v2574_v36 = vshrl.u32 %v57_v35, 7 }
  0x32   :  { %373 = vmatprep.subr.bf16.mxu0 %v2161_v9  ;;  %v50_v41 = vld [vmem:[%s2665_s1] sm:$0xf] }
  0x33   :  { %v2577_v37 = vsub.s32 0, %v2574_v36  ;;  %v2580_v38 = vsub.s32 2, %v2574_v36  ;;  %v2583_v39 = vsub.s32 1, %v2574_v36  ;;  %v2586_v40 = vsub.s32 3, %v2574_v36 }
  0x35   :  { %374 = vmatpush1.bf16.msra.mxu0 %v2163_v10  ;;  %v60_v42 = vrot.slane %v50_v41, %v2577_v37  ;;  %v64_v43 = vrot.slane %v50_v41, %v2580_v38  ;;  %v84_v44 = vrot.slane %v50_v41, %v2583_v39  ;;  %v88_v45 = vrot.slane %v50_v41, %v2586_v40 }
  0x36   :  { %375 = vmatprep.subr.bf16.mxu0 %v2164_v11  ;;  %v163_v41 = vsub.s32 6, %v2574_v36 }
  0x37   :  { %v70_v47 = vrot.slane %v60_v42, %v2577_v37  ;;  %v74_v48 = vrot.slane %v64_v43, %v2577_v37  ;;  %v94_v49 = vrot.slane %v84_v44, %v2583_v39  ;;  %v98_v50 = vrot.slane %v88_v45, %v2583_v39 }
  0x39   :  { %376 = vmatpush1.bf16.msra.mxu0 %v2166_v12 }
  0x3a   :  { %377 = vmatprep.subr.bf16.mxu0 %v2167_v13 }
  0x3d   :  { %378 = vmatpush1.bf16.msra.mxu0 %v2169_v14 }
  0x3e   :  { %379 = vmatprep.subr.bf16.mxu0 %v2170_v15 }
  0x41   :  { %380 = vmatpush1.bf16.msra.mxu0 %v2172_v16 }
  0x42   :  { %381 = vmatprep.subr.bf16.mxu0 %v2173_v17 }
  0x45   :  { %382 = vmatpush1.bf16.msra.mxu0 %v2175_v18 }
  0x46   :  { %383 = vmatprep.subr.bf16.mxu0 %v2176_v19 }
  0x49   :  { %384 = vmatpush1.bf16.msra.mxu0 %v2178_v20 }
  0x4a   :  { %385 = vmatprep.subr.bf16.mxu0 %v2179_v21 }
  0x4d   :  { %386 = vmatpush1.bf16.msra.mxu0 %v2181_v22 }
  0x4e   :  { %387 = vmatprep.subr.bf16.mxu0 %v2182_v23 }
  0x51   :  { %388 = vmatpush1.bf16.msra.mxu0 %v2184_v24 }
  0x52   :  { %389 = vmatprep.subr.bf16.mxu0 %v2185_v25 }
  0x55   :  { %390 = vmatpush1.bf16.msra.mxu0 %v2187_v26 }
  0x56   :  { %391 = vmatprep.subr.bf16.mxu0 %v2188_v27 }
  0x59   :  { %392 = vmatpush1.bf16.msra.mxu0 %v2190_v28  ;;  %v2599_v28 = vld [vmem:[#allocation4] sm:$0xff] }
  0x5a   :  { %393 = vmatprep.subr.bf16.mxu0 %v2191_v29  ;;  %v2601_v29 = vld [vmem:[#allocation4 + $0x8] sm:$0xff] }
  0x5d   :  { %394 = vmatpush1.bf16.msra.mxu0 %v2193_v30 }
  0x5e   :  { %395 = vmatprep.subr.bf16.mxu0 %v2194_v31 }
  0x61   :  { %396 = vmatpush1.bf16.msra.mxu0 %v2196_v32 }
  0x62   :  { %397 = vmatprep.subr.bf16.mxu0 %v2197_v33 }
  0x65   :  { %398 = vmatpush1.bf16.msra.mxu0 %v2199_v34 }
  0xa7   :  { %v54_v46 = vpop.permute.xlu0 %53 }
  0xa8   :  { %v75_v52 = vmul.f32 %v70_v47, %v54_v46  ;;  %v76_v53 = vmul.f32 %v74_v48, %v54_v46 }
  0xac   :  { %v79_v51 = vpop.permute.xlu0 %78 }
  0xad   :  { %v99_v54 = vmul.f32 %v94_v49, %v79_v51  ;;  %v100_v55 = vmul.f32 %v98_v50, %v79_v51 }
  0xaf   :  { %v101_v56 = vadd.f32 %v99_v54, %v75_v52  ;;  %v102_v57 = vadd.f32 %v100_v55, %v76_v53 }
  0xb1   :  { %v103_v58 = vrot.slane %v101_v56, 4  ;;  %v109_v59 = vrot.slane %v102_v57, 4 }
  0xb3   :  { %v104_v60 = vadd.f32 %v103_v58, %v101_v56  ;;  %v110_v61 = vadd.f32 %v109_v59, %v102_v57 }
  0xb5   :  { %v105_v62 = vrot.slane %v104_v60, 2  ;;  %v111_v63 = vrot.slane %v110_v61, 2 }
  0xb7   :  { %v106_v0 = vadd.f32 %v105_v62, %v104_v60  ;;  %v112_v1 = vadd.f32 %v111_v63, %v110_v61  ;;  %v2200_v60 = vld [vmem:[#allocation2 + $0x104] ss:$8 sps:$4 sm:$0xff]   ;;  %v2202_v61 = vld [vmem:[#allocation2 + $0x100] ss:$8 sps:$4 sm:$0xff]   ;;  %v2203_v62 = vld [vmem:[#allocation2 + $0x114] ss:$8 sps:$4 sm:$0xff]  }
  0xb8   :  { %673 = vmatprep.subr.bf16.mxu1 %v2200_v60  ;;  %v2205_v63 = vld [vmem:[#allocation2 + $0x110] ss:$8 sps:$4 sm:$0xff]  }
  0xb9   :  { %v107_v2 = vrot.slane %v106_v0, 1  ;;  %v113_v3 = vrot.slane %v112_v1, 1  ;;  %674 = vmatpush1.bf16.msra.mxu1 %v2202_v61 }
  0xba   :  { %675 = vmatprep.subr.bf16.mxu1 %v2203_v62 }
  0xbb   :  { %v108_v4 = vadd.f32 %v107_v2, %v106_v0  ;;  %v114_v5 = vadd.f32 %v113_v3, %v112_v1  ;;  %v2208_v0 = vld [vmem:[#allocation2 + $0x120] ss:$8 sps:$4 sm:$0xff]   ;;  %v2211_v1 = vld [vmem:[#allocation2 + $0x130] ss:$8 sps:$4 sm:$0xff]   ;;  %v2212_v2 = vld [vmem:[#allocation2 + $0x144] ss:$8 sps:$4 sm:$0xff]  }
  0xbc   :  { %v2214_v3 = vld [vmem:[#allocation2 + $0x140] ss:$8 sps:$4 sm:$0xff]  }
  0xbd   :  { %v115_v6 = vmul.f32 0.125, %v108_v4  ;;  %v116_v7 = vmul.f32 0.125, %v114_v5  ;;  %676 = vmatpush1.bf16.msra.mxu1 %v2205_v63  ;;  %v2215_v4 = vld [vmem:[#allocation2 + $0x154] ss:$8 sps:$4 sm:$0xff]   ;;  %v2217_v5 = vld [vmem:[#allocation2 + $0x150] ss:$8 sps:$4 sm:$0xff]  }
  0xbf   :  { %v117_v8 = vsub.f32 %v101_v56, %v115_v6  ;;  %v118_v9 = vsub.f32 %v102_v57, %v116_v7 }
  0xc1   :  { %v119_v10 = vmul.f32 %v117_v8, %v117_v8  ;;  %v120_v11 = vmul.f32 %v118_v9, %v118_v9  ;;  %v2221_v8 = vld [vmem:[#allocation2 + $0x174] ss:$8 sps:$4 sm:$0xff]   ;;  %v2223_v9 = vld [vmem:[#allocation2 + $0x170] ss:$8 sps:$4 sm:$0xff]  }
  0xc3   :  { %v121_v12 = vrot.slane %v119_v10, 4  ;;  %v127_v13 = vrot.slane %v120_v11, 4 }
  0xc5   :  { %v122_v14 = vadd.f32 %v121_v12, %v119_v10  ;;  %v128_v15 = vadd.f32 %v127_v13, %v120_v11  ;;  %v2224_v10 = vld [vmem:[#allocation2 + $0x184] ss:$8 sps:$4 sm:$0xff]   ;;  %v2226_v11 = vld [vmem:[#allocation2 + $0x180] ss:$8 sps:$4 sm:$0xff]   ;;  %v2227_v12 = vld [vmem:[#allocation2 + $0x194] ss:$8 sps:$4 sm:$0xff]  }
  0xc6   :  { %v2229_v13 = vld [vmem:[#allocation2 + $0x190] ss:$8 sps:$4 sm:$0xff]  }
  0xc7   :  { %v123_v16 = vrot.slane %v122_v14, 2  ;;  %v129_v17 = vrot.slane %v128_v15, 2 }
  0xc9   :  { %v124_v18 = vadd.f32 %v123_v16, %v122_v14  ;;  %v130_v19 = vadd.f32 %v129_v17, %v128_v15  ;;  %v2230_v14 = vld [vmem:[#allocation2 + $0x1a4] ss:$8 sps:$4 sm:$0xff]   ;;  %v2232_v15 = vld [vmem:[#allocation2 + $0x1a0] ss:$8 sps:$4 sm:$0xff]   ;;  %v2233_v16 = vld [vmem:[#allocation2 + $0x1b4] ss:$8 sps:$4 sm:$0xff]  }
  0xca   :  { %v2235_v17 = vld [vmem:[#allocation2 + $0x1b0] ss:$8 sps:$4 sm:$0xff]  }
  0xcb   :  { %v125_v20 = vrot.slane %v124_v18, 1  ;;  %v131_v21 = vrot.slane %v130_v19, 1 }
  0xcd   :  { %v126_v22 = vadd.f32 %v125_v20, %v124_v18  ;;  %v132_v23 = vadd.f32 %v131_v21, %v130_v19  ;;  %v2236_v18 = vld [vmem:[#allocation2 + $0x1c4] ss:$8 sps:$4 sm:$0xff]   ;;  %v2238_v19 = vld [vmem:[#allocation2 + $0x1c0] ss:$8 sps:$4 sm:$0xff]   ;;  %v2239_v20 = vld [vmem:[#allocation2 + $0x1d4] ss:$8 sps:$4 sm:$0xff]  }
  0xce   :  { %v2241_v21 = vld [vmem:[#allocation2 + $0x1d0] ss:$8 sps:$4 sm:$0xff]  }
  0xcf   :  { %v133_v24 = vmul.f32 0.125, %v126_v22  ;;  %v134_v25 = vmul.f32 0.125, %v132_v23  ;;  %v2242_v22 = vld [vmem:[#allocation2 + $0x1e4] ss:$8 sps:$4 sm:$0xff]   ;;  %v2244_v23 = vld [vmem:[#allocation2 + $0x1e0] ss:$8 sps:$4 sm:$0xff]  }
  0xd1   :  { %v135_v26 = vadd.f32 1e-05, %v133_v24  ;;  %v136_v27 = vadd.f32 1e-05, %v134_v25  ;;  %v2245_v24 = vld [vmem:[#allocation2 + $0x1f4] ss:$8 sps:$4 sm:$0xff]  }
  0xd2   :  { %v2247_v25 = vld [vmem:[#allocation2 + $0x1f0] ss:$8 sps:$4 sm:$0xff]  }
  0xd3   :  { %2440 = vrsqrt.f32 %v135_v26 }
  0xd4   :  { %2442 = vrsqrt.f32 %v136_v27 }
  0xdd   :  { %v2441_v30 = vpop.eup %2440 }
  0xde   :  { %v2443_v31 = vpop.eup %2442  ;;  %v139_v32 = vmul.f32 %v2441_v30, %v2599_v28 }
  0xdf   :  { %v140_v33 = vmul.f32 %v2443_v31, %v2601_v29 }
  0xe0   :  { %v141_v34 = vmul.f32 %v139_v32, %v115_v6  ;;  %v154_v43 = vrot.slane %v139_v32, %v2577_v37  ;;  %v2218_v6 = vld [vmem:[#allocation2 + $0x164] ss:$8 sps:$4 sm:$0xff]  }
  0xe1   :  { %v142_v35 = vmul.f32 %v140_v33, %v116_v7  ;;  %v158_v45 = vrot.slane %v140_v33, %v2577_v37  ;;  %v2220_v7 = vld [vmem:[#allocation2 + $0x160] ss:$8 sps:$4 sm:$0xff]  }
  0xe2   :  { %v145_v42 = vrot.slane %v141_v34, 2  ;;  %v159_v48 = vmul.f32 %v154_v43, %v101_v56  ;;  %v2206_v56 = vld [vmem:[#allocation2 + $0x124] ss:$8 sps:$4 sm:$0xff]  }
  0xe3   :  { %v146_v44 = vrot.slane %v142_v35, 2  ;;  %v160_v50 = vmul.f32 %v158_v45, %v102_v57  ;;  %677 = vmatprep.subr.bf16.mxu1 %v2206_v56  ;;  %v2209_v57 = vld [vmem:[#allocation2 + $0x134] ss:$8 sps:$4 sm:$0xff]  }
  0xe4   :  { %v149_v46 = vsub.f32 %v2599_v28, %v145_v42  ;;  %678 = vmatpush1.bf16.msra.mxu1 %v2208_v0 }
  0xe5   :  { %v150_v47 = vsub.f32 %v2601_v29, %v146_v44  ;;  %679 = vmatprep.subr.bf16.mxu1 %v2209_v57 }
  0xe6   :  { %v164_v49 = vrot.slane %v149_v46, %v163_v41 }
  0xe7   :  { %v168_v51 = vrot.slane %v150_v47, %v163_v41 }
  0xe8   :  { %v169_v52 = vadd.f32 %v164_v49, %v159_v48  ;;  %680 = vmatpush1.bf16.msra.mxu1 %v2211_v1 }
  0xe9   :  { %v170_v53 = vadd.f32 %v168_v51, %v160_v50  ;;  %681 = vmatprep.subr.bf16.mxu1 %v2212_v2 }
  0xea   :  { %v171_v54 = vmax.f32 %v169_v52, 0.0 }
  0xeb   :  { %v172_v55 = vmax.f32 %v170_v53, 0.0 }
  0xec   :  { %v205_v58 = vpack.c.bf16 %v171_v54, %v171_v54  ;;  %682 = vmatpush1.bf16.msra.mxu1 %v2214_v3 }
  0xed   :  { %v206_v59 = vpack.c.bf16 %v172_v55, %v172_v55  ;;  %683 = vmatprep.subr.bf16.mxu1 %v2215_v4 }
  0xef   :  { %399 = vmatprep.mubr.bf16.mxu0 %v206_v59 }
  0xf0   :  { %400 = vmatmul.mubr.bf16.vlgmr.msra.gmra.mrb[0].mxu0 %v205_v58  ;;  %684 = vmatpush1.bf16.msra.mxu1 %v2217_v5 }
  0xf1   :  { %685 = vmatprep.subr.bf16.mxu1 %v2218_v6 }
  0xf4   :  { %686 = vmatpush1.bf16.msra.mxu1 %v2220_v7 }
  0xf5   :  { %687 = vmatprep.subr.bf16.mxu1 %v2221_v8 }
  0xf8   :  { %688 = vmatpush1.bf16.msra.mxu1 %v2223_v9 }
  0xf9   :  { %689 = vmatprep.subr.bf16.mxu1 %v2224_v10 }
  0xfc   :  { %690 = vmatpush1.bf16.msra.mxu1 %v2226_v11 }
  0xfd   :  { %691 = vmatprep.subr.bf16.mxu1 %v2227_v12 }
 0x100   :  { %692 = vmatpush1.bf16.msra.mxu1 %v2229_v13 }
 0x101   :  { %693 = vmatprep.subr.bf16.mxu1 %v2230_v14 }
 0x104   :  { %694 = vmatpush1.bf16.msra.mxu1 %v2232_v15  ;;  %v468_v15 = vsub.s32 7, %v2574_v36 }
 0x105   :  { %695 = vmatprep.subr.bf16.mxu1 %v2233_v16 }
 0x108   :  { %696 = vmatpush1.bf16.msra.mxu1 %v2235_v17 }
 0x109   :  { %697 = vmatprep.subr.bf16.mxu1 %v2236_v18 }
 0x10c   :  { %698 = vmatpush1.bf16.msra.mxu1 %v2238_v19 }
 0x10d   :  { %699 = vmatprep.subr.bf16.mxu1 %v2239_v20 }
 0x110   :  { %700 = vmatpush1.bf16.msra.mxu1 %v2241_v21 }
 0x111   :  { %701 = vmatprep.subr.bf16.mxu1 %v2242_v22 }
 0x114   :  { %702 = vmatpush1.bf16.msra.mxu1 %v2244_v23 }
 0x115   :  { %703 = vmatprep.subr.bf16.mxu1 %v2245_v24 }
 0x118   :  { %704 = vmatpush1.bf16.msra.mxu1 %v2247_v25 }
 0x1c3   :  { %v401_v26 = vpop.f32.mrb[0].mxu0 }
 0x1c4   :  { %v408_v27 = vrot.slane %v401_v26, 4  ;;  %v403_v30 = vpop.f32.mrb[1].mxu0 }
 0x1c5   :  { %v414_v31 = vrot.slane %v403_v30, 4  ;;  %v405_v32 = vpop.f32.mrb[2].mxu0 }
 0x1c6   :  { %v409_v33 = vadd.f32 %v408_v27, %v401_v26  ;;  %v406_v34 = vpop.f32.mrb[3].mxu0 }
 0x1c7   :  { %v415_v35 = vadd.f32 %v414_v31, %v403_v30  ;;  %v2250_v34 = vld [vmem:[#allocation2 + $0x204] ss:$8 sps:$4 sm:$0xff]  }
 0x1c8   :  { %v410_v41 = vrot.slane %v409_v33, 2  ;;  %979 = vmatprep.subr.bf16.mxu0 %v2250_v34 }
 0x1c9   :  { %v416_v42 = vrot.slane %v415_v35, 2 }
 0x1ca   :  { %v411_v43 = vadd.f32 %v410_v41, %v409_v33  ;;  %v2253_v41 = vld [vmem:[#allocation2 + $0x214] ss:$8 sps:$4 sm:$0xff]  }
 0x1cb   :  { %v417_v44 = vadd.f32 %v416_v42, %v415_v35  ;;  %v2248_v35 = vld [vmem:[#allocation2 + $0x200] ss:$8 sps:$4 sm:$0xff]   ;;  %v2251_v42 = vld [vmem:[#allocation2 + $0x210] ss:$8 sps:$4 sm:$0xff]  }
 0x1cc   :  { %v412_v45 = vrot.slane %v411_v43, 1  ;;  %980 = vmatpush1.bf16.msra.mxu0 %v2248_v35 }
 0x1cd   :  { %v418_v46 = vrot.slane %v417_v44, 1  ;;  %981 = vmatprep.subr.bf16.mxu0 %v2253_v41 }
 0x1ce   :  { %v413_v47 = vadd.f32 %v412_v45, %v411_v43  ;;  %v2254_v43 = vld [vmem:[#allocation2 + $0x220] ss:$8 sps:$4 sm:$0xff]   ;;  %v2262_v45 = vld [vmem:[#allocation2 + $0x244] ss:$8 sps:$4 sm:$0xff]  }
 0x1cf   :  { %v419_v48 = vadd.f32 %v418_v46, %v417_v44  ;;  %v2257_v44 = vld [vmem:[#allocation2 + $0x230] ss:$8 sps:$4 sm:$0xff]   ;;  %v2260_v46 = vld [vmem:[#allocation2 + $0x240] ss:$8 sps:$4 sm:$0xff]  }
 0x1d0   :  { %v420_v49 = vmul.f32 0.125, %v413_v47  ;;  %982 = vmatpush1.bf16.msra.mxu0 %v2251_v42  ;;  %v2265_v47 = vld [vmem:[#allocation2 + $0x254] ss:$8 sps:$4 sm:$0xff]  }
 0x1d1   :  { %v421_v50 = vmul.f32 0.125, %v419_v48  ;;  %v2263_v48 = vld [vmem:[#allocation2 + $0x250] ss:$8 sps:$4 sm:$0xff]  }
 0x1d2   :  { %v422_v51 = vsub.f32 %v401_v26, %v420_v49 }
 0x1d3   :  { %v423_v52 = vsub.f32 %v403_v30, %v421_v50 }
 0x1d4   :  { %v424_v53 = vmul.f32 %v422_v51, %v422_v51  ;;  %v2271_v51 = vld [vmem:[#allocation2 + $0x274] ss:$8 sps:$4 sm:$0xff]  }
 0x1d5   :  { %v425_v54 = vmul.f32 %v423_v52, %v423_v52  ;;  %v2269_v52 = vld [vmem:[#allocation2 + $0x270] ss:$8 sps:$4 sm:$0xff]  }
 0x1d6   :  { %v426_v55 = vrot.slane %v424_v53, 4 }
 0x1d7   :  { %v432_v58 = vrot.slane %v425_v54, 4 }
 0x1d8   :  { %v427_v59 = vadd.f32 %v426_v55, %v424_v53  ;;  %v2274_v53 = vld [vmem:[#allocation2 + $0x284] ss:$8 sps:$4 sm:$0xff]   ;;  %v2277_v55 = vld [vmem:[#allocation2 + $0x294] ss:$8 sps:$4 sm:$0xff]  }
 0x1d9   :  { %v433_v60 = vadd.f32 %v432_v58, %v425_v54  ;;  %v2272_v54 = vld [vmem:[#allocation2 + $0x280] ss:$8 sps:$4 sm:$0xff]   ;;  %v2275_v58 = vld [vmem:[#allocation2 + $0x290] ss:$8 sps:$4 sm:$0xff]  }
 0x1da   :  { %v428_v61 = vrot.slane %v427_v59, 2 }
 0x1db   :  { %v434_v62 = vrot.slane %v433_v60, 2 }
 0x1dc   :  { %v429_v63 = vadd.f32 %v428_v61, %v427_v59  ;;  %v2280_v59 = vld [vmem:[#allocation2 + $0x2a4] ss:$8 sps:$4 sm:$0xff]   ;;  %v2283_v61 = vld [vmem:[#allocation2 + $0x2b4] ss:$8 sps:$4 sm:$0xff]  }
 0x1dd   :  { %v435_v56 = vadd.f32 %v434_v62, %v433_v60  ;;  %v2278_v60 = vld [vmem:[#allocation2 + $0x2a0] ss:$8 sps:$4 sm:$0xff]   ;;  %v2281_v62 = vld [vmem:[#allocation2 + $0x2b0] ss:$8 sps:$4 sm:$0xff]  }
 0x1de   :  { %v430_v0 = vrot.slane %v429_v63, 1 }
 0x1df   :  { %v436_v57 = vrot.slane %v435_v56, 1 }
 0x1e0   :  { %v431_v1 = vadd.f32 %v430_v0, %v429_v63  ;;  %v2286_v63 = vld [vmem:[#allocation2 + $0x2c4] ss:$8 sps:$4 sm:$0xff]   ;;  %v2289_v0 = vld [vmem:[#allocation2 + $0x2d4] ss:$8 sps:$4 sm:$0xff]  }
 0x1e1   :  { %v437_v2 = vadd.f32 %v436_v57, %v435_v56  ;;  %v2284_v56 = vld [vmem:[#allocation2 + $0x2c0] ss:$8 sps:$4 sm:$0xff]   ;;  %v2287_v57 = vld [vmem:[#allocation2 + $0x2d0] ss:$8 sps:$4 sm:$0xff]  }
 0x1e2   :  { %v438_v3 = vmul.f32 0.125, %v431_v1  ;;  %v2292_v1 = vld [vmem:[#allocation2 + $0x2e4] ss:$8 sps:$4 sm:$0xff]  }
 0x1e3   :  { %v439_v4 = vmul.f32 0.125, %v437_v2  ;;  %v2290_v2 = vld [vmem:[#allocation2 + $0x2e0] ss:$8 sps:$4 sm:$0xff]  }
 0x1e4   :  { %v440_v5 = vadd.f32 1e-05, %v438_v3  ;;  %v2295_v3 = vld [vmem:[#allocation2 + $0x2f4] ss:$8 sps:$4 sm:$0xff]  }
 0x1e5   :  { %v441_v6 = vadd.f32 1e-05, %v439_v4  ;;  %v2293_v4 = vld [vmem:[#allocation2 + $0x2f0] ss:$8 sps:$4 sm:$0xff]  }
 0x1e6   :  { %2444 = vrsqrt.f32 %v440_v5 }
 0x1e7   :  { %2446 = vrsqrt.f32 %v441_v6 }
 0x1f0   :  { %v2445_v7 = vpop.eup %2444 }
 0x1f1   :  { %v2447_v8 = vpop.eup %2446  ;;  %v444_v9 = vmul.f32 %v2445_v7, %v2599_v28 }
 0x1f2   :  { %v445_v10 = vmul.f32 %v2447_v8, %v2601_v29 }
 0x1f3   :  { %v446_v11 = vmul.f32 %v444_v9, %v420_v49  ;;  %v459_v14 = vrot.slane %v444_v9, %v2583_v39  ;;  %v2268_v49 = vld [vmem:[#allocation2 + $0x264] ss:$8 sps:$4 sm:$0xff]  }
 0x1f4   :  { %v447_v12 = vmul.f32 %v445_v10, %v421_v50  ;;  %v463_v17 = vrot.slane %v445_v10, %v2583_v39  ;;  %v2266_v50 = vld [vmem:[#allocation2 + $0x260] ss:$8 sps:$4 sm:$0xff]  }
 0x1f5   :  { %v450_v13 = vrot.slane %v446_v11, 2  ;;  %v464_v20 = vmul.f32 %v459_v14, %v401_v26  ;;  %v2256_v26 = vld [vmem:[#allocation2 + $0x224] ss:$8 sps:$4 sm:$0xff]  }
 0x1f6   :  { %v451_v16 = vrot.slane %v447_v12, 2  ;;  %v465_v22 = vmul.f32 %v463_v17, %v403_v30  ;;  %983 = vmatprep.subr.bf16.mxu0 %v2256_v26  ;;  %v2259_v30 = vld [vmem:[#allocation2 + $0x234] ss:$8 sps:$4 sm:$0xff]  }
 0x1f7   :  { %v454_v18 = vsub.f32 %v2599_v28, %v450_v13  ;;  %984 = vmatpush1.bf16.msra.mxu0 %v2254_v43 }
 0x1f8   :  { %v455_v19 = vsub.f32 %v2601_v29, %v451_v16  ;;  %985 = vmatprep.subr.bf16.mxu0 %v2259_v30 }
 0x1f9   :  { %v469_v21 = vrot.slane %v454_v18, %v468_v15 }
 0x1fa   :  { %v473_v23 = vrot.slane %v455_v19, %v468_v15 }
 0x1fb   :  { %v474_v24 = vadd.f32 %v469_v21, %v464_v20  ;;  %986 = vmatpush1.bf16.msra.mxu0 %v2257_v44 }
 0x1fc   :  { %v475_v25 = vadd.f32 %v473_v23, %v465_v22  ;;  %987 = vmatprep.subr.bf16.mxu0 %v2262_v45 }
 0x1fd   :  { %v476_v27 = vmax.f32 %v474_v24, 0.0 }
 0x1fe   :  { %v477_v31 = vmax.f32 %v475_v25, 0.0 }
 0x1ff   :  { %v511_v33 = vpack.c.bf16 %v476_v27, %v476_v27  ;;  %988 = vmatpush1.bf16.msra.mxu0 %v2260_v46 }
 0x200   :  { %v512_v32 = vpack.c.bf16 %v477_v31, %v477_v31  ;;  %989 = vmatprep.subr.bf16.mxu0 %v2265_v47 }
 0x202   :  { %705 = vmatprep.mubr.bf16.mxu1 %v512_v32 }
 0x203   :  { %706 = vmatmul.mubr.bf16.vlgmr.msra.gmra.mrb[0].mxu1 %v511_v33  ;;  %990 = vmatpush1.bf16.msra.mxu0 %v2263_v48 }
 0x204   :  { %991 = vmatprep.subr.bf16.mxu0 %v2268_v49 }
 0x207   :  { %992 = vmatpush1.bf16.msra.mxu0 %v2266_v50 }
 0x208   :  { %993 = vmatprep.subr.bf16.mxu0 %v2271_v51 }
 0x20b   :  { %994 = vmatpush1.bf16.msra.mxu0 %v2269_v52 }
 0x20c   :  { %995 = vmatprep.subr.bf16.mxu0 %v2274_v53 }
 0x20f   :  { %996 = vmatpush1.bf16.msra.mxu0 %v2272_v54 }
 0x210   :  { %997 = vmatprep.subr.bf16.mxu0 %v2277_v55  ;;  %v2619_v55 = vld [vmem:[#allocation4 + $0x10] sm:$0xff] }
 0x213   :  { %998 = vmatpush1.bf16.msra.mxu0 %v2275_v58 }
 0x214   :  { %999 = vmatprep.subr.bf16.mxu0 %v2280_v59 }
 0x217   :  { %1000 = vmatpush1.bf16.msra.mxu0 %v2278_v60 }
 0x218   :  { %1001 = vmatprep.subr.bf16.mxu0 %v2283_v61  ;;  %v2622_v61 = vld [vmem:[#allocation4 + $0x18] sm:$0xff] }
 0x21b   :  { %1002 = vmatpush1.bf16.msra.mxu0 %v2281_v62 }
 0x21c   :  { %1003 = vmatprep.subr.bf16.mxu0 %v2286_v63 }
 0x21f   :  { %1004 = vmatpush1.bf16.msra.mxu0 %v2284_v56 }
 0x220   :  { %1005 = vmatprep.subr.bf16.mxu0 %v2289_v0 }
 0x223   :  { %1006 = vmatpush1.bf16.msra.mxu0 %v2287_v57 }
 0x224   :  { %1007 = vmatprep.subr.bf16.mxu0 %v2292_v1 }
 0x227   :  { %1008 = vmatpush1.bf16.msra.mxu0 %v2290_v2 }
 0x228   :  { %1009 = vmatprep.subr.bf16.mxu0 %v2295_v3 }
 0x22b   :  { %1010 = vmatpush1.bf16.msra.mxu0 %v2293_v4 }
 0x2d6   :  { %v707_v5 = vpop.f32.mrb[0].mxu1 }
 0x2d7   :  { %v714_v6 = vrot.slane %v707_v5, 4  ;;  %v709_v7 = vpop.f32.mrb[1].mxu1 }
 0x2d8   :  { %v720_v8 = vrot.slane %v709_v7, 4  ;;  %v711_v9 = vpop.f32.mrb[2].mxu1 }
 0x2d9   :  { %v715_v10 = vadd.f32 %v714_v6, %v707_v5  ;;  %v712_v11 = vpop.f32.mrb[3].mxu1 }
 0x2da   :  { %v721_v12 = vadd.f32 %v720_v8, %v709_v7 }
 0x2db   :  { %v716_v13 = vrot.slane %v715_v10, 2 }
 0x2dc   :  { %v722_v14 = vrot.slane %v721_v12, 2 }
 0x2dd   :  { %v717_v15 = vadd.f32 %v716_v13, %v715_v10  ;;  %v2296_v13 = vld [vmem:[#allocation2 + $0x300] ss:$8 sps:$4 sm:$0xff]  }
 0x2de   :  { %v723_v16 = vadd.f32 %v722_v14, %v721_v12  ;;  %v2298_v12 = vld [vmem:[#allocation2 + $0x304] ss:$8 sps:$4 sm:$0xff]   ;;  %v2301_v14 = vld [vmem:[#allocation2 + $0x314] ss:$8 sps:$4 sm:$0xff]  }
 0x2df   :  { %v718_v17 = vrot.slane %v717_v15, 1  ;;  %1285 = vmatprep.subr.bf16.mxu1 %v2298_v12 }
 0x2e0   :  { %v724_v18 = vrot.slane %v723_v16, 1  ;;  %1286 = vmatpush1.bf16.msra.mxu1 %v2296_v13 }
 0x2e1   :  { %v719_v19 = vadd.f32 %v718_v17, %v717_v15  ;;  %v2299_v15 = vld [vmem:[#allocation2 + $0x310] ss:$8 sps:$4 sm:$0xff]   ;;  %1287 = vmatprep.subr.bf16.mxu1 %v2301_v14  ;;  %v2310_v17 = vld [vmem:[#allocation2 + $0x344] ss:$8 sps:$4 sm:$0xff]  }
 0x2e2   :  { %v725_v20 = vadd.f32 %v724_v18, %v723_v16  ;;  %v2305_v16 = vld [vmem:[#allocation2 + $0x330] ss:$8 sps:$4 sm:$0xff]   ;;  %v2308_v18 = vld [vmem:[#allocation2 + $0x340] ss:$8 sps:$4 sm:$0xff]  }
 0x2e3   :  { %v726_v21 = vmul.f32 0.125, %v719_v19  ;;  %v2313_v19 = vld [vmem:[#allocation2 + $0x354] ss:$8 sps:$4 sm:$0xff]  }
 0x2e4   :  { %v727_v22 = vmul.f32 0.125, %v725_v20  ;;  %1288 = vmatpush1.bf16.msra.mxu1 %v2299_v15  ;;  %v2311_v20 = vld [vmem:[#allocation2 + $0x350] ss:$8 sps:$4 sm:$0xff]  }
 0x2e5   :  { %v728_v23 = vsub.f32 %v707_v5, %v726_v21 }
 0x2e6   :  { %v729_v24 = vsub.f32 %v709_v7, %v727_v22 }
 0x2e7   :  { %v730_v25 = vmul.f32 %v728_v23, %v728_v23  ;;  %v2319_v23 = vld [vmem:[#allocation2 + $0x374] ss:$8 sps:$4 sm:$0xff]  }
 0x2e8   :  { %v731_v27 = vmul.f32 %v729_v24, %v729_v24  ;;  %v2317_v24 = vld [vmem:[#allocation2 + $0x370] ss:$8 sps:$4 sm:$0xff]  }
 0x2e9   :  { %v732_v31 = vrot.slane %v730_v25, 4 }
 0x2ea   :  { %v738_v32 = vrot.slane %v731_v27, 4 }
 0x2eb   :  { %v733_v33 = vadd.f32 %v732_v31, %v730_v25  ;;  %v2322_v25 = vld [vmem:[#allocation2 + $0x384] ss:$8 sps:$4 sm:$0xff]   ;;  %v2325_v31 = vld [vmem:[#allocation2 + $0x394] ss:$8 sps:$4 sm:$0xff]  }
 0x2ec   :  { %v739_v34 = vadd.f32 %v738_v32, %v731_v27  ;;  %v2320_v27 = vld [vmem:[#allocation2 + $0x380] ss:$8 sps:$4 sm:$0xff]   ;;  %v2323_v32 = vld [vmem:[#allocation2 + $0x390] ss:$8 sps:$4 sm:$0xff]  }
 0x2ed   :  { %v734_v35 = vrot.slane %v733_v33, 2 }
 0x2ee   :  { %v740_v41 = vrot.slane %v739_v34, 2 }
 0x2ef   :  { %v735_v42 = vadd.f32 %v734_v35, %v733_v33  ;;  %v2328_v33 = vld [vmem:[#allocation2 + $0x3a4] ss:$8 sps:$4 sm:$0xff]   ;;  %v2331_v35 = vld [vmem:[#allocation2 + $0x3b4] ss:$8 sps:$4 sm:$0xff]  }
 0x2f0   :  { %v741_v26 = vadd.f32 %v740_v41, %v739_v34  ;;  %v2326_v34 = vld [vmem:[#allocation2 + $0x3a0] ss:$8 sps:$4 sm:$0xff]   ;;  %v2329_v41 = vld [vmem:[#allocation2 + $0x3b0] ss:$8 sps:$4 sm:$0xff]  }
 0x2f1   :  { %v736_v43 = vrot.slane %v735_v42, 1 }
 0x2f2   :  { %v742_v30 = vrot.slane %v741_v26, 1 }
 0x2f3   :  { %v737_v44 = vadd.f32 %v736_v43, %v735_v42  ;;  %v2334_v42 = vld [vmem:[#allocation2 + $0x3c4] ss:$8 sps:$4 sm:$0xff]   ;;  %v2337_v43 = vld [vmem:[#allocation2 + $0x3d4] ss:$8 sps:$4 sm:$0xff]  }
 0x2f4   :  { %v743_v45 = vadd.f32 %v742_v30, %v741_v26  ;;  %v2332_v26 = vld [vmem:[#allocation2 + $0x3c0] ss:$8 sps:$4 sm:$0xff]   ;;  %v2335_v30 = vld [vmem:[#allocation2 + $0x3d0] ss:$8 sps:$4 sm:$0xff]  }
 0x2f5   :  { %v744_v46 = vmul.f32 0.125, %v737_v44  ;;  %v2340_v44 = vld [vmem:[#allocation2 + $0x3e4] ss:$8 sps:$4 sm:$0xff]  }
 0x2f6   :  { %v745_v47 = vmul.f32 0.125, %v743_v45  ;;  %v2338_v45 = vld [vmem:[#allocation2 + $0x3e0] ss:$8 sps:$4 sm:$0xff]  }
 0x2f7   :  { %v746_v48 = vadd.f32 1e-05, %v744_v46  ;;  %v2343_v46 = vld [vmem:[#allocation2 + $0x3f4] ss:$8 sps:$4 sm:$0xff]  }
 0x2f8   :  { %v747_v49 = vadd.f32 1e-05, %v745_v47  ;;  %v2341_v47 = vld [vmem:[#allocation2 + $0x3f0] ss:$8 sps:$4 sm:$0xff]  }
 0x2f9   :  { %2448 = vrsqrt.f32 %v746_v48 }
 0x2fa   :  { %2450 = vrsqrt.f32 %v747_v49 }
 0x303   :  { %v2449_v50 = vpop.eup %2448 }
 0x304   :  { %v2451_v51 = vpop.eup %2450  ;;  %v750_v52 = vmul.f32 %v2449_v50, %v2599_v28 }
 0x305   :  { %v751_v53 = vmul.f32 %v2451_v51, %v2601_v29 }
 0x306   :  { %v752_v54 = vmul.f32 %v750_v52, %v726_v21  ;;  %v765_v60 = vrot.slane %v750_v52, %v2580_v38  ;;  %v2316_v21 = vld [vmem:[#allocation2 + $0x364] ss:$8 sps:$4 sm:$0xff]  }
 0x307   :  { %v753_v58 = vmul.f32 %v751_v53, %v727_v22  ;;  %v769_v63 = vrot.slane %v751_v53, %v2580_v38  ;;  %v2314_v22 = vld [vmem:[#allocation2 + $0x360] ss:$8 sps:$4 sm:$0xff]  }
 0x308   :  { %v756_v59 = vrot.slane %v752_v54, 2  ;;  %v770_v57 = vmul.f32 %v765_v60, %v707_v5  ;;  %v2304_v5 = vld [vmem:[#allocation2 + $0x324] ss:$8 sps:$4 sm:$0xff]  }
 0x309   :  { %v757_v62 = vrot.slane %v753_v58, 2  ;;  %v771_v2 = vmul.f32 %v769_v63, %v709_v7  ;;  %v2302_v7 = vld [vmem:[#allocation2 + $0x320] ss:$8 sps:$4 sm:$0xff]   ;;  %1289 = vmatprep.subr.bf16.mxu1 %v2304_v5 }
 0x30a   :  { %v760_v56 = vsub.f32 %v2619_v55, %v756_v59  ;;  %1290 = vmatpush1.bf16.msra.mxu1 %v2302_v7 }
 0x30b   :  { %v761_v0 = vsub.f32 %v2622_v61, %v757_v62 }
 0x30c   :  { %v775_v1 = vrot.slane %v760_v56, %v2577_v37 }
 0x30d   :  { %v779_v3 = vrot.slane %v761_v0, %v2577_v37  ;;  %v2307_v37 = vld [vmem:[#allocation2 + $0x334] ss:$8 sps:$4 sm:$0xff]  }
 0x30e   :  { %v780_v4 = vadd.f32 %v775_v1, %v770_v57  ;;  %1291 = vmatprep.subr.bf16.mxu1 %v2307_v37 }
 0x30f   :  { %v781_v6 = vadd.f32 %v779_v3, %v771_v2  ;;  %1292 = vmatpush1.bf16.msra.mxu1 %v2305_v16 }
 0x310   :  { %v782_v8 = vmax.f32 %v780_v4, 0.0  ;;  %1293 = vmatprep.subr.bf16.mxu1 %v2310_v17 }
 0x311   :  { %v783_v9 = vmax.f32 %v781_v6, 0.0 }
 0x312   :  { %v817_v11 = vpack.c.bf16 %v782_v8, %v782_v8 }
 0x313   :  { %v818_v10 = vpack.c.bf16 %v783_v9, %v783_v9  ;;  %1294 = vmatpush1.bf16.msra.mxu1 %v2308_v18 }
 0x314   :  { %1295 = vmatprep.subr.bf16.mxu1 %v2313_v19 }
 0x315   :  { %1011 = vmatprep.mubr.bf16.mxu0 %v818_v10 }
 0x316   :  { %1012 = vmatmul.mubr.bf16.vlgmr.msra.gmra.mrb[4].mxu0 %v817_v11 }
 0x317   :  { %1296 = vmatpush1.bf16.msra.mxu1 %v2311_v20 }
 0x318   :  { %1297 = vmatprep.subr.bf16.mxu1 %v2316_v21 }
 0x31b   :  { %1298 = vmatpush1.bf16.msra.mxu1 %v2314_v22 }
 0x31c   :  { %1299 = vmatprep.subr.bf16.mxu1 %v2319_v23 }
 0x31f   :  { %1300 = vmatpush1.bf16.msra.mxu1 %v2317_v24 }
 0x320   :  { %1301 = vmatprep.subr.bf16.mxu1 %v2322_v25 }
 0x323   :  { %1302 = vmatpush1.bf16.msra.mxu1 %v2320_v27 }
 0x324   :  { %1303 = vmatprep.subr.bf16.mxu1 %v2325_v31 }
 0x327   :  { %1304 = vmatpush1.bf16.msra.mxu1 %v2323_v32 }
 0x328   :  { %1305 = vmatprep.subr.bf16.mxu1 %v2328_v33 }
 0x32b   :  { %1306 = vmatpush1.bf16.msra.mxu1 %v2326_v34 }
 0x32c   :  { %1307 = vmatprep.subr.bf16.mxu1 %v2331_v35 }
 0x32f   :  { %1308 = vmatpush1.bf16.msra.mxu1 %v2329_v41 }
 0x330   :  { %1309 = vmatprep.subr.bf16.mxu1 %v2334_v42 }
 0x333   :  { %1310 = vmatpush1.bf16.msra.mxu1 %v2332_v26 }
 0x334   :  { %1311 = vmatprep.subr.bf16.mxu1 %v2337_v43 }
 0x337   :  { %1312 = vmatpush1.bf16.msra.mxu1 %v2335_v30 }
 0x338   :  { %1313 = vmatprep.subr.bf16.mxu1 %v2340_v44 }
 0x33b   :  { %1314 = vmatpush1.bf16.msra.mxu1 %v2338_v45 }
 0x33c   :  { %1315 = vmatprep.subr.bf16.mxu1 %v2343_v46 }
 0x33f   :  { %1316 = vmatpush1.bf16.msra.mxu1 %v2341_v47 }
 0x3e9   :  { %v1013_v48 = vpop.f32.mrb[4].mxu0 }
 0x3ea   :  { %v1020_v49 = vrot.slane %v1013_v48, 4  ;;  %v1015_v50 = vpop.f32.mrb[5].mxu0 }
 0x3eb   :  { %v1026_v51 = vrot.slane %v1015_v50, 4  ;;  %v1017_v52 = vpop.f32.mrb[6].mxu0 }
 0x3ec   :  { %v1021_v53 = vadd.f32 %v1020_v49, %v1013_v48  ;;  %v1018_v54 = vpop.f32.mrb[7].mxu0  ;;  %v2346_v52 = vld [vmem:[#allocation2 + $0x404] ss:$8 sps:$4 sm:$0xff]  }
 0x3ed   :  { %v1027_v58 = vadd.f32 %v1026_v51, %v1015_v50  ;;  %1591 = vmatprep.subr.bf16.mxu0 %v2346_v52  ;;  %v2349_v54 = vld [vmem:[#allocation2 + $0x414] ss:$8 sps:$4 sm:$0xff]  }
 0x3ee   :  { %v1022_v59 = vrot.slane %v1021_v53, 2 }
 0x3ef   :  { %v1028_v60 = vrot.slane %v1027_v58, 2 }
 0x3f0   :  { %v1023_v62 = vadd.f32 %v1022_v59, %v1021_v53  ;;  %v2344_v53 = vld [vmem:[#allocation2 + $0x400] ss:$8 sps:$4 sm:$0xff]   ;;  %v2353_v59 = vld [vmem:[#allocation2 + $0x430] ss:$8 sps:$4 sm:$0xff]  }
 0x3f1   :  { %v1029_v63 = vadd.f32 %v1028_v60, %v1027_v58  ;;  %1592 = vmatpush1.bf16.msra.mxu0 %v2344_v53  ;;  %v2347_v58 = vld [vmem:[#allocation2 + $0x410] ss:$8 sps:$4 sm:$0xff]   ;;  %v2358_v60 = vld [vmem:[#allocation2 + $0x444] ss:$8 sps:$4 sm:$0xff]  }
 0x3f2   :  { %v1024_v56 = vrot.slane %v1023_v62, 1  ;;  %1593 = vmatprep.subr.bf16.mxu0 %v2349_v54 }
 0x3f3   :  { %v1030_v0 = vrot.slane %v1029_v63, 1 }
 0x3f4   :  { %v1025_v57 = vadd.f32 %v1024_v56, %v1023_v62  ;;  %v2356_v62 = vld [vmem:[#allocation2 + $0x440] ss:$8 sps:$4 sm:$0xff]   ;;  %v2359_v56 = vld [vmem:[#allocation2 + $0x450] ss:$8 sps:$4 sm:$0xff]  }
 0x3f5   :  { %v1031_v1 = vadd.f32 %v1030_v0, %v1029_v63  ;;  %1594 = vmatpush1.bf16.msra.mxu0 %v2347_v58  ;;  %v2361_v63 = vld [vmem:[#allocation2 + $0x454] ss:$8 sps:$4 sm:$0xff]   ;;  %v2364_v0 = vld [vmem:[#allocation2 + $0x464] ss:$8 sps:$4 sm:$0xff]  }
 0x3f6   :  { %v1032_v2 = vmul.f32 0.125, %v1025_v57  ;;  %v2362_v57 = vld [vmem:[#allocation2 + $0x460] ss:$8 sps:$4 sm:$0xff]  }
 0x3f7   :  { %v1033_v3 = vmul.f32 0.125, %v1031_v1  ;;  %v2367_v1 = vld [vmem:[#allocation2 + $0x474] ss:$8 sps:$4 sm:$0xff]  }
 0x3f8   :  { %v1034_v4 = vsub.f32 %v1013_v48, %v1032_v2 }
 0x3f9   :  { %v1035_v6 = vsub.f32 %v1015_v50, %v1033_v3 }
 0x3fa   :  { %v1036_v8 = vmul.f32 %v1034_v4, %v1034_v4  ;;  %v2368_v4 = vld [vmem:[#allocation2 + $0x480] ss:$8 sps:$4 sm:$0xff]  }
 0x3fb   :  { %v1037_v9 = vmul.f32 %v1035_v6, %v1035_v6  ;;  %v2373_v6 = vld [vmem:[#allocation2 + $0x494] ss:$8 sps:$4 sm:$0xff]  }
 0x3fc   :  { %v1038_v10 = vrot.slane %v1036_v8, 4 }
 0x3fd   :  { %v1044_v11 = vrot.slane %v1037_v9, 4 }
 0x3fe   :  { %v1039_v12 = vadd.f32 %v1038_v10, %v1036_v8  ;;  %v2371_v8 = vld [vmem:[#allocation2 + $0x490] ss:$8 sps:$4 sm:$0xff]   ;;  %v2374_v10 = vld [vmem:[#allocation2 + $0x4a0] ss:$8 sps:$4 sm:$0xff]  }
 0x3ff   :  { %v1045_v13 = vadd.f32 %v1044_v11, %v1037_v9  ;;  %v2376_v9 = vld [vmem:[#allocation2 + $0x4a4] ss:$8 sps:$4 sm:$0xff]   ;;  %v2379_v11 = vld [vmem:[#allocation2 + $0x4b4] ss:$8 sps:$4 sm:$0xff]  }
 0x400   :  { %v1040_v14 = vrot.slane %v1039_v12, 2 }
 0x401   :  { %v1046_v15 = vrot.slane %v1045_v13, 2 }
 0x402   :  { %v1041_v5 = vadd.f32 %v1040_v14, %v1039_v12  ;;  %v2377_v12 = vld [vmem:[#allocation2 + $0x4b0] ss:$8 sps:$4 sm:$0xff]   ;;  %v2380_v14 = vld [vmem:[#allocation2 + $0x4c0] ss:$8 sps:$4 sm:$0xff]  }
 0x403   :  { %v1047_v7 = vadd.f32 %v1046_v15, %v1045_v13  ;;  %v2382_v13 = vld [vmem:[#allocation2 + $0x4c4] ss:$8 sps:$4 sm:$0xff]   ;;  %v2385_v15 = vld [vmem:[#allocation2 + $0x4d4] ss:$8 sps:$4 sm:$0xff]  }
 0x404   :  { %v1042_v37 = vrot.slane %v1041_v5, 1 }
 0x405   :  { %v1048_v16 = vrot.slane %v1047_v7, 1 }
 0x406   :  { %v1043_v17 = vadd.f32 %v1042_v37, %v1041_v5  ;;  %v2383_v5 = vld [vmem:[#allocation2 + $0x4d0] ss:$8 sps:$4 sm:$0xff]   ;;  %v2386_v37 = vld [vmem:[#allocation2 + $0x4e0] ss:$8 sps:$4 sm:$0xff]  }
 0x407   :  { %v1049_v18 = vadd.f32 %v1048_v16, %v1047_v7  ;;  %v2388_v7 = vld [vmem:[#allocation2 + $0x4e4] ss:$8 sps:$4 sm:$0xff]   ;;  %v2391_v16 = vld [vmem:[#allocation2 + $0x4f4] ss:$8 sps:$4 sm:$0xff]  }
 0x408   :  { %v1050_v19 = vmul.f32 0.125, %v1043_v17  ;;  %v2389_v17 = vld [vmem:[#allocation2 + $0x4f0] ss:$8 sps:$4 sm:$0xff]  }
 0x409   :  { %v1051_v20 = vmul.f32 0.125, %v1049_v18 }
 0x40a   :  { %v1052_v21 = vadd.f32 1e-05, %v1050_v19 }
 0x40b   :  { %v1053_v22 = vadd.f32 1e-05, %v1051_v20 }
 0x40c   :  { %2452 = vrsqrt.f32 %v1052_v21 }
 0x40d   :  { %2454 = vrsqrt.f32 %v1053_v22 }
 0x416   :  { %v2453_v23 = vpop.eup %2452 }
 0x417   :  { %v2455_v24 = vpop.eup %2454  ;;  %v1056_v25 = vmul.f32 %v2453_v23, %v2599_v28 }
 0x418   :  { %v1057_v27 = vmul.f32 %v2455_v24, %v2601_v29 }
 0x419   :  { %v1058_v31 = vmul.f32 %v1056_v25, %v1032_v2  ;;  %v1071_v34 = vrot.slane %v1056_v25, %v2586_v40  ;;  %v2365_v2 = vld [vmem:[#allocation2 + $0x470] ss:$8 sps:$4 sm:$0xff]  }
 0x41a   :  { %v1059_v32 = vmul.f32 %v1057_v27, %v1033_v3  ;;  %v1075_v41 = vrot.slane %v1057_v27, %v2586_v40  ;;  %v2370_v3 = vld [vmem:[#allocation2 + $0x484] ss:$8 sps:$4 sm:$0xff]  }
 0x41b   :  { %v1062_v33 = vrot.slane %v1058_v31, 2  ;;  %v1076_v43 = vmul.f32 %v1071_v34, %v1013_v48  ;;  %v2352_v48 = vld [vmem:[#allocation2 + $0x424] ss:$8 sps:$4 sm:$0xff]  }
 0x41c   :  { %v1063_v35 = vrot.slane %v1059_v32, 2  ;;  %v1077_v44 = vmul.f32 %v1075_v41, %v1015_v50  ;;  %v2350_v50 = vld [vmem:[#allocation2 + $0x420] ss:$8 sps:$4 sm:$0xff]   ;;  %1595 = vmatprep.subr.bf16.mxu0 %v2352_v48 }
 0x41d   :  { %v1066_v42 = vsub.f32 %v2619_v55, %v1062_v33  ;;  %1596 = vmatpush1.bf16.msra.mxu0 %v2350_v50 }
 0x41e   :  { %v1067_v26 = vsub.f32 %v2622_v61, %v1063_v35 }
 0x41f   :  { %v1081_v30 = vrot.slane %v1066_v42, %v2583_v39 }
 0x420   :  { %v1085_v28 = vrot.slane %v1067_v26, %v2583_v39  ;;  %v2355_v39 = vld [vmem:[#allocation2 + $0x434] ss:$8 sps:$4 sm:$0xff]  }
 0x421   :  { %v1086_v45 = vadd.f32 %v1081_v30, %v1076_v43  ;;  %1597 = vmatprep.subr.bf16.mxu0 %v2355_v39 }
 0x422   :  { %v1087_v29 = vadd.f32 %v1085_v28, %v1077_v44  ;;  %1598 = vmatpush1.bf16.msra.mxu0 %v2353_v59 }
 0x423   :  { %v1088_v46 = vmax.f32 %v1086_v45, 0.0  ;;  %1599 = vmatprep.subr.bf16.mxu0 %v2358_v60 }
 0x424   :  { %v1089_v47 = vmax.f32 %v1087_v29, 0.0 }
 0x425   :  { %v1123_v51 = vpack.c.bf16 %v1088_v46, %v1088_v46 }
 0x426   :  { %v1124_v49 = vpack.c.bf16 %v1089_v47, %v1089_v47  ;;  %1600 = vmatpush1.bf16.msra.mxu0 %v2356_v62 }
 0x427   :  { %1601 = vmatprep.subr.bf16.mxu0 %v2361_v63 }
 0x428   :  { %1317 = vmatprep.mubr.bf16.mxu1 %v1124_v49 }
 0x429   :  { %1318 = vmatmul.mubr.bf16.vlgmr.msra.gmra.mrb[4].mxu1 %v1123_v51 }
 0x42a   :  { %1602 = vmatpush1.bf16.msra.mxu0 %v2359_v56 }
 0x42b   :  { %1603 = vmatprep.subr.bf16.mxu0 %v2364_v0 }
 0x42e   :  { %1604 = vmatpush1.bf16.msra.mxu0 %v2362_v57  ;;  %v2637_v57 = vld [vmem:[#allocation4] sm:$0xff] }
 0x42f   :  { %1605 = vmatprep.subr.bf16.mxu0 %v2367_v1 }
 0x432   :  { %1606 = vmatpush1.bf16.msra.mxu0 %v2365_v2  ;;  %v2641_v2 = vsub.s32 4, %v2574_v36 }
 0x433   :  { %1607 = vmatprep.subr.bf16.mxu0 %v2370_v3  ;;  %v2643_v3 = vld [vmem:[#allocation4 + $0x8] sm:$0xff] }
 0x436   :  { %1608 = vmatpush1.bf16.msra.mxu0 %v2368_v4 }
 0x437   :  { %1609 = vmatprep.subr.bf16.mxu0 %v2373_v6 }
 0x43a   :  { %1610 = vmatpush1.bf16.msra.mxu0 %v2371_v8 }
 0x43b   :  { %1611 = vmatprep.subr.bf16.mxu0 %v2376_v9 }
 0x43e   :  { %1612 = vmatpush1.bf16.msra.mxu0 %v2374_v10 }
 0x43f   :  { %1613 = vmatprep.subr.bf16.mxu0 %v2379_v11 }
 0x442   :  { %1614 = vmatpush1.bf16.msra.mxu0 %v2377_v12 }
 0x443   :  { %1615 = vmatprep.subr.bf16.mxu0 %v2382_v13 }
 0x446   :  { %1616 = vmatpush1.bf16.msra.mxu0 %v2380_v14 }
 0x447   :  { %1617 = vmatprep.subr.bf16.mxu0 %v2385_v15 }
 0x44a   :  { %1618 = vmatpush1.bf16.msra.mxu0 %v2383_v5 }
 0x44b   :  { %1619 = vmatprep.subr.bf16.mxu0 %v2388_v7 }
 0x44e   :  { %1620 = vmatpush1.bf16.msra.mxu0 %v2386_v37 }
 0x44f   :  { %1621 = vmatprep.subr.bf16.mxu0 %v2391_v16 }
 0x452   :  { %1622 = vmatpush1.bf16.msra.mxu0 %v2389_v17 }
 0x4fc   :  { %v1319_v18 = vpop.f32.mrb[4].mxu1 }
 0x4fd   :  { %v1326_v19 = vrot.slane %v1319_v18, 4  ;;  %v1321_v20 = vpop.f32.mrb[5].mxu1 }
 0x4fe   :  { %v1332_v21 = vrot.slane %v1321_v20, 4  ;;  %v1323_v22 = vpop.f32.mrb[6].mxu1 }
 0x4ff   :  { %v1327_v23 = vadd.f32 %v1326_v19, %v1319_v18  ;;  %v1324_v24 = vpop.f32.mrb[7].mxu1 }
 0x500   :  { %v1333_v25 = vadd.f32 %v1332_v21, %v1321_v20  ;;  %v2394_v24 = vld [vmem:[#allocation2 + $0x504] ss:$8 sps:$4 sm:$0xff]  }
 0x501   :  { %v1328_v27 = vrot.slane %v1327_v23, 2  ;;  %1897 = vmatprep.subr.bf16.mxu1 %v2394_v24 }
 0x502   :  { %v1334_v31 = vrot.slane %v1333_v25, 2 }
 0x503   :  { %v1329_v32 = vadd.f32 %v1328_v27, %v1327_v23  ;;  %v2397_v27 = vld [vmem:[#allocation2 + $0x514] ss:$8 sps:$4 sm:$0xff]  }
 0x504   :  { %v1335_v33 = vadd.f32 %v1334_v31, %v1333_v25  ;;  %v2392_v25 = vld [vmem:[#allocation2 + $0x500] ss:$8 sps:$4 sm:$0xff]   ;;  %v2395_v31 = vld [vmem:[#allocation2 + $0x510] ss:$8 sps:$4 sm:$0xff]  }
 0x505   :  { %v1330_v34 = vrot.slane %v1329_v32, 1  ;;  %1898 = vmatpush1.bf16.msra.mxu1 %v2392_v25 }
 0x506   :  { %v1336_v35 = vrot.slane %v1335_v33, 1  ;;  %1899 = vmatprep.subr.bf16.mxu1 %v2397_v27 }
 0x507   :  { %v1331_v41 = vadd.f32 %v1330_v34, %v1329_v32  ;;  %v2401_v32 = vld [vmem:[#allocation2 + $0x530] ss:$8 sps:$4 sm:$0xff]   ;;  %v2404_v34 = vld [vmem:[#allocation2 + $0x540] ss:$8 sps:$4 sm:$0xff]  }
 0x508   :  { %v1337_v42 = vadd.f32 %v1336_v35, %v1335_v33  ;;  %v2406_v33 = vld [vmem:[#allocation2 + $0x544] ss:$8 sps:$4 sm:$0xff]   ;;  %v2409_v35 = vld [vmem:[#allocation2 + $0x554] ss:$8 sps:$4 sm:$0xff]  }
 0x509   :  { %v1338_v26 = vmul.f32 0.125, %v1331_v41  ;;  %1900 = vmatpush1.bf16.msra.mxu1 %v2395_v31  ;;  %v2407_v41 = vld [vmem:[#allocation2 + $0x550] ss:$8 sps:$4 sm:$0xff]  }
 0x50a   :  { %v1339_v43 = vmul.f32 0.125, %v1337_v42  ;;  %v2412_v42 = vld [vmem:[#allocation2 + $0x564] ss:$8 sps:$4 sm:$0xff]  }
 0x50b   :  { %v1340_v30 = vsub.f32 %v1319_v18, %v1338_v26 }
 0x50c   :  { %v1341_v44 = vsub.f32 %v1321_v20, %v1339_v43 }
 0x50d   :  { %v1342_v28 = vmul.f32 %v1340_v30, %v1340_v30  ;;  %v2413_v30 = vld [vmem:[#allocation2 + $0x570] ss:$8 sps:$4 sm:$0xff]  }
 0x50e   :  { %v1343_v45 = vmul.f32 %v1341_v44, %v1341_v44  ;;  %v2418_v44 = vld [vmem:[#allocation2 + $0x584] ss:$8 sps:$4 sm:$0xff]  }
 0x50f   :  { %v1344_v29 = vrot.slane %v1342_v28, 4 }
 0x510   :  { %v1350_v46 = vrot.slane %v1343_v45, 4 }
 0x511   :  { %v1345_v47 = vadd.f32 %v1344_v29, %v1342_v28  ;;  %v2416_v28 = vld [vmem:[#allocation2 + $0x580] ss:$8 sps:$4 sm:$0xff]   ;;  %v2419_v29 = vld [vmem:[#allocation2 + $0x590] ss:$8 sps:$4 sm:$0xff]  }
 0x512   :  { %v1351_v49 = vadd.f32 %v1350_v46, %v1343_v45  ;;  %v2421_v45 = vld [vmem:[#allocation2 + $0x594] ss:$8 sps:$4 sm:$0xff]   ;;  %v2424_v46 = vld [vmem:[#allocation2 + $0x5a4] ss:$8 sps:$4 sm:$0xff]  }
 0x513   :  { %v1346_v51 = vrot.slane %v1345_v47, 2 }
 0x514   :  { %v1352_v52 = vrot.slane %v1351_v49, 2 }
 0x515   :  { %v1347_v53 = vadd.f32 %v1346_v51, %v1345_v47  ;;  %v2422_v47 = vld [vmem:[#allocation2 + $0x5a0] ss:$8 sps:$4 sm:$0xff]   ;;  %v2425_v51 = vld [vmem:[#allocation2 + $0x5b0] ss:$8 sps:$4 sm:$0xff]  }
 0x516   :  { %v1353_v54 = vadd.f32 %v1352_v52, %v1351_v49  ;;  %v2427_v49 = vld [vmem:[#allocation2 + $0x5b4] ss:$8 sps:$4 sm:$0xff]   ;;  %v2430_v52 = vld [vmem:[#allocation2 + $0x5c4] ss:$8 sps:$4 sm:$0xff]  }
 0x517   :  { %v1348_v58 = vrot.slane %v1347_v53, 1 }
 0x518   :  { %v1354_v48 = vrot.slane %v1353_v54, 1 }
 0x519   :  { %v1349_v50 = vadd.f32 %v1348_v58, %v1347_v53  ;;  %v2428_v53 = vld [vmem:[#allocation2 + $0x5c0] ss:$8 sps:$4 sm:$0xff]   ;;  %v2431_v58 = vld [vmem:[#allocation2 + $0x5d0] ss:$8 sps:$4 sm:$0xff]  }
 0x51a   :  { %v1355_v39 = vadd.f32 %v1354_v48, %v1353_v54  ;;  %v2433_v54 = vld [vmem:[#allocation2 + $0x5d4] ss:$8 sps:$4 sm:$0xff]   ;;  %v2436_v48 = vld [vmem:[#allocation2 + $0x5e4] ss:$8 sps:$4 sm:$0xff]  }
 0x51b   :  { %v1356_v59 = vmul.f32 0.125, %v1349_v50  ;;  %v2434_v50 = vld [vmem:[#allocation2 + $0x5e0] ss:$8 sps:$4 sm:$0xff]  }
 0x51c   :  { %v1357_v60 = vmul.f32 0.125, %v1355_v39  ;;  %v2439_v39 = vld [vmem:[#allocation2 + $0x5f4] ss:$8 sps:$4 sm:$0xff]  }
 0x51d   :  { %v1358_v62 = vadd.f32 1e-05, %v1356_v59  ;;  %v2437_v59 = vld [vmem:[#allocation2 + $0x5f0] ss:$8 sps:$4 sm:$0xff]  }
 0x51e   :  { %v1359_v63 = vadd.f32 1e-05, %v1357_v60 }
 0x51f   :  { %2456 = vrsqrt.f32 %v1358_v62 }
 0x520   :  { %2458 = vrsqrt.f32 %v1359_v63 }
 0x529   :  { %v2457_v56 = vpop.eup %2456 }
 0x52a   :  { %v2459_v0 = vpop.eup %2458  ;;  %v1362_v1 = vmul.f32 %v2637_v57, %v2457_v56 }
 0x52b   :  { %v1363_v4 = vmul.f32 %v2643_v3, %v2459_v0 }
 0x52c   :  { %v1364_v6 = vmul.f32 %v1362_v1, %v1338_v26  ;;  %v1377_v10 = vrot.slane %v1362_v1, %v2641_v2  ;;  %v2410_v26 = vld [vmem:[#allocation2 + $0x560] ss:$8 sps:$4 sm:$0xff]  }
 0x52d   :  { %v1365_v8 = vmul.f32 %v1363_v4, %v1339_v43  ;;  %v1381_v12 = vrot.slane %v1363_v4, %v2641_v2  ;;  %v2415_v43 = vld [vmem:[#allocation2 + $0x574] ss:$8 sps:$4 sm:$0xff]  }
 0x52e   :  { %v1368_v9 = vrot.slane %v1364_v6, 2  ;;  %v1382_v15 = vmul.f32 %v1377_v10, %v1319_v18  ;;  %v2400_v18 = vld [vmem:[#allocation2 + $0x524] ss:$8 sps:$4 sm:$0xff]  }
 0x52f   :  { %v1369_v11 = vrot.slane %v1365_v8, 2  ;;  %v1383_v7 = vmul.f32 %v1381_v12, %v1321_v20  ;;  %v2398_v20 = vld [vmem:[#allocation2 + $0x520] ss:$8 sps:$4 sm:$0xff]   ;;  %1901 = vmatprep.subr.bf16.mxu1 %v2400_v18 }
 0x530   :  { %v1372_v13 = vsub.f32 %v2619_v55, %v1368_v9  ;;  %1902 = vmatpush1.bf16.msra.mxu1 %v2398_v20 }
 0x531   :  { %v1373_v14 = vsub.f32 %v2622_v61, %v1369_v11 }
 0x532   :  { %v1387_v5 = vrot.slane %v1372_v13, %v2580_v38 }
 0x533   :  { %v1391_v37 = vrot.slane %v1373_v14, %v2580_v38  ;;  %v2403_v38 = vld [vmem:[#allocation2 + $0x534] ss:$8 sps:$4 sm:$0xff]  }
 0x534   :  { %v1392_v16 = vadd.f32 %v1387_v5, %v1382_v15  ;;  %1903 = vmatprep.subr.bf16.mxu1 %v2403_v38 }
 0x535   :  { %v1393_v17 = vadd.f32 %v1391_v37, %v1383_v7  ;;  %1904 = vmatpush1.bf16.msra.mxu1 %v2401_v32 }
 0x536   :  { %v1394_v19 = vmax.f32 %v1392_v16, 0.0  ;;  %1905 = vmatprep.subr.bf16.mxu1 %v2406_v33 }
 0x537   :  { %v1395_v21 = vmax.f32 %v1393_v17, 0.0 }
 0x538   :  { %v1429_v23 = vpack.c.bf16 %v1394_v19, %v1394_v19 }
 0x539   :  { %v1430_v22 = vpack.c.bf16 %v1395_v21, %v1395_v21  ;;  %1906 = vmatpush1.bf16.msra.mxu1 %v2404_v34 }
 0x53a   :  { %1907 = vmatprep.subr.bf16.mxu1 %v2409_v35 }
 0x53b   :  { %1623 = vmatprep.mubr.bf16.mxu0 %v1430_v22 }
 0x53c   :  { %1624 = vmatmul.mubr.bf16.vlgmr.msra.gmra.mrb[8].mxu0 %v1429_v23 }
 0x53d   :  { %1908 = vmatpush1.bf16.msra.mxu1 %v2407_v41 }
 0x53e   :  { %1909 = vmatprep.subr.bf16.mxu1 %v2412_v42 }
 0x541   :  { %1910 = vmatpush1.bf16.msra.mxu1 %v2410_v26 }
 0x542   :  { %1911 = vmatprep.subr.bf16.mxu1 %v2415_v43 }
 0x545   :  { %1912 = vmatpush1.bf16.msra.mxu1 %v2413_v30 }
 0x546   :  { %1913 = vmatprep.subr.bf16.mxu1 %v2418_v44  ;;  %v1682_v44 = vsub.s32 5, %v2574_v36 }
 0x549   :  { %1914 = vmatpush1.bf16.msra.mxu1 %v2416_v28 }
 0x54a   :  { %1915 = vmatprep.subr.bf16.mxu1 %v2421_v45 }
 0x54d   :  { %1916 = vmatpush1.bf16.msra.mxu1 %v2419_v29 }
 0x54e   :  { %1917 = vmatprep.subr.bf16.mxu1 %v2424_v46 }
 0x551   :  { %1918 = vmatpush1.bf16.msra.mxu1 %v2422_v47 }
 0x552   :  { %1919 = vmatprep.subr.bf16.mxu1 %v2427_v49 }
 0x555   :  { %1920 = vmatpush1.bf16.msra.mxu1 %v2425_v51 }
 0x556   :  { %1921 = vmatprep.subr.bf16.mxu1 %v2430_v52 }
 0x559   :  { %1922 = vmatpush1.bf16.msra.mxu1 %v2428_v53 }
 0x55a   :  { %1923 = vmatprep.subr.bf16.mxu1 %v2433_v54 }
 0x55d   :  { %1924 = vmatpush1.bf16.msra.mxu1 %v2431_v58 }
 0x55e   :  { %1925 = vmatprep.subr.bf16.mxu1 %v2436_v48 }
 0x561   :  { %1926 = vmatpush1.bf16.msra.mxu1 %v2434_v50 }
 0x562   :  { %1927 = vmatprep.subr.bf16.mxu1 %v2439_v39 }
 0x565   :  { %1928 = vmatpush1.bf16.msra.mxu1 %v2437_v59 }
 0x60f   :  { %v1625_v60 = vpop.f32.mrb[8].mxu0 }
 0x610   :  { %v1632_v62 = vrot.slane %v1625_v60, 4  ;;  %v1627_v63 = vpop.f32.mrb[9].mxu0 }
 0x611   :  { %v1638_v56 = vrot.slane %v1627_v63, 4  ;;  %v1629_v0 = vpop.f32.mrb[10].mxu0 }
 0x612   :  { %v1633_v1 = vadd.f32 %v1632_v62, %v1625_v60  ;;  %v1630_v4 = vpop.f32.mrb[11].mxu0 }
 0x613   :  { %v1639_v6 = vadd.f32 %v1638_v56, %v1627_v63  ;;  %v1940_v56 = vrot.slane %v2619_v55, %v2641_v2 }
 0x614   :  { %v1634_v8 = vrot.slane %v1633_v1, 2 }
 0x615   :  { %v1640_v9 = vrot.slane %v1639_v6, 2 }
 0x616   :  { %v1635_v10 = vadd.f32 %v1634_v8, %v1633_v1 }
 0x617   :  { %v1641_v11 = vadd.f32 %v1640_v9, %v1639_v6 }
 0x618   :  { %v1636_v12 = vrot.slane %v1635_v10, 1 }
 0x619   :  { %v1642_v13 = vrot.slane %v1641_v11, 1 }
 0x61a   :  { %v1637_v14 = vadd.f32 %v1636_v12, %v1635_v10 }
 0x61b   :  { %v1643_v15 = vadd.f32 %v1642_v13, %v1641_v11 }
 0x61c   :  { %v1644_v5 = vmul.f32 0.125, %v1637_v14 }
 0x61d   :  { %v1645_v7 = vmul.f32 0.125, %v1643_v15 }
 0x61e   :  { %v1646_v37 = vsub.f32 %v1625_v60, %v1644_v5 }
 0x61f   :  { %v1647_v16 = vsub.f32 %v1627_v63, %v1645_v7 }
 0x620   :  { %v1648_v17 = vmul.f32 %v1646_v37, %v1646_v37 }
 0x621   :  { %v1649_v19 = vmul.f32 %v1647_v16, %v1647_v16 }
 0x622   :  { %v1650_v21 = vrot.slane %v1648_v17, 4 }
 0x623   :  { %v1656_v22 = vrot.slane %v1649_v19, 4 }
 0x624   :  { %v1651_v23 = vadd.f32 %v1650_v21, %v1648_v17 }
 0x625   :  { %v1657_v24 = vadd.f32 %v1656_v22, %v1649_v19 }
 0x626   :  { %v1652_v25 = vrot.slane %v1651_v23, 2 }
 0x627   :  { %v1658_v27 = vrot.slane %v1657_v24, 2 }
 0x628   :  { %v1653_v31 = vadd.f32 %v1652_v25, %v1651_v23 }
 0x629   :  { %v1659_v18 = vadd.f32 %v1658_v27, %v1657_v24 }
 0x62a   :  { %v1654_v20 = vrot.slane %v1653_v31, 1 }
 0x62b   :  { %v1660_v38 = vrot.slane %v1659_v18, 1 }
 0x62c   :  { %v1655_v32 = vadd.f32 %v1654_v20, %v1653_v31 }
 0x62d   :  { %v1661_v33 = vadd.f32 %v1660_v38, %v1659_v18 }
 0x62e   :  { %v1662_v34 = vmul.f32 0.125, %v1655_v32 }
 0x62f   :  { %v1663_v35 = vmul.f32 0.125, %v1661_v33 }
 0x630   :  { %v1664_v41 = vadd.f32 1e-05, %v1662_v34 }
 0x631   :  { %v1665_v42 = vadd.f32 1e-05, %v1663_v35 }
 0x632   :  { %2460 = vrsqrt.f32 %v1664_v41 }
 0x633   :  { %2462 = vrsqrt.f32 %v1665_v42 }
 0x63c   :  { %v2461_v26 = vpop.eup %2460 }
 0x63d   :  { %v2463_v43 = vpop.eup %2462  ;;  %v1668_v30 = vmul.f32 %v2637_v57, %v2461_v26 }
 0x63e   :  { %v1669_v28 = vmul.f32 %v2643_v3, %v2463_v43 }
 0x63f   :  { %v1670_v45 = vmul.f32 %v1668_v30, %v1644_v5  ;;  %v1683_v47 = vrot.slane %v1668_v30, %v1682_v44 }
 0x640   :  { %v1671_v29 = vmul.f32 %v1669_v28, %v1645_v7  ;;  %v1687_v51 = vrot.slane %v1669_v28, %v1682_v44 }
 0x641   :  { %v1674_v46 = vrot.slane %v1670_v45, 2  ;;  %v1688_v54 = vmul.f32 %v1683_v47, %v1625_v60 }
 0x642   :  { %v1675_v49 = vrot.slane %v1671_v29, 2  ;;  %v1689_v48 = vmul.f32 %v1687_v51, %v1627_v63 }
 0x643   :  { %v1678_v52 = vsub.f32 %v2619_v55, %v1674_v46 }
 0x644   :  { %v1679_v53 = vsub.f32 %v2622_v61, %v1675_v49 }
 0x645   :  { %v1693_v58 = vrot.slane %v1678_v52, %v2586_v40 }
 0x646   :  { %v1697_v57 = vrot.slane %v1679_v53, %v2586_v40 }
 0x647   :  { %v1698_v50 = vadd.f32 %v1693_v58, %v1688_v54 }
 0x648   :  { %v1699_v36 = vadd.f32 %v1697_v57, %v1689_v48 }
 0x649   :  { %v1700_v39 = vmax.f32 %v1698_v50, 0.0 }
 0x64a   :  { %v1701_v3 = vmax.f32 %v1699_v36, 0.0 }
 0x64b   :  { %v1735_v62 = vpack.c.bf16 %v1700_v39, %v1700_v39 }
 0x64c   :  { %v1736_v59 = vpack.c.bf16 %v1701_v3, %v1701_v3 }
 0x64e   :  { %1929 = vmatprep.mubr.bf16.mxu1 %v1736_v59 }
 0x64f   :  { %1930 = vmatmul.mubr.bf16.vlgmr.msra.gmra.mrb[8].mxu1 %v1735_v62 }
 0x722   :  { %v1931_v0 = vpop.f32.mrb[8].mxu1 }
 0x723   :  { %v1941_v61 = vadd.f32 %v1940_v56, %v1931_v0  ;;  %v1933_v60 = vpop.f32.mrb[9].mxu1 }
 0x724   :  { %v1934_v1 = vpop.f32.mrb[10].mxu1 }
 0x725   :  { %1943 = vst.msk [vmem:[%s2668_s4] sm:$0xff] %vm1942_vm0, %v1941_v61  ;;  %v1935_v40 = vpop.f32.mrb[11].mxu1 }
 0x726   :  { %1948 = vsyncpa [#allocation3], 1 }
 0x727   :  { %1949 = vsyncpa [#allocation5], 1 }

</bundles_post_ra>
